<compile_context>
chip_gen: v6e
topology: v6e:2x2x1
jax: 0.10.0
libtpu: 0.0.40
codegen_flags: <defaults>
</compile_context>

<pallas_src>
import jax
import jax.numpy as jnp
from jax import lax
from jax.experimental import pallas as pl
from jax.experimental.pallas import tpu as pltpu


def lstm_kernel(x_ref, wih_ref, whh_ref, b_ref, fcw_ref, fcb_ref,
                out_ref, xproj_scr):
    # x_ref:    (T*Bp, I)   time-major, batch-padded input
    # wih_ref:  (I, 4*Hp)   W_ih^T, gate-blocked & zero-padded
    # whh_ref:  (Hp, 4*Hp)  W_hh^T, gate-blocked & zero-padded
    # b_ref:    (1, 4*Hp)   b_ih + b_hh, gate-blocked & zero-padded
    # fcw_ref:  (Hp, Op)    fc weight^T, zero-padded
    # fcb_ref:  (1, Op)     fc bias, zero-padded
    # out_ref:  (Bp, Op)
    # xproj_scr:(T*Bp, 4*Hp) VMEM scratch for the hoisted input projection
    Bp = out_ref.shape[0]
    T = x_ref.shape[0] // Bp
    Hp = whh_ref.shape[0]

    # ---- input projection for ALL timesteps in one MXU matmul (bias folded in once) ----
    xproj_scr[...] = (
        jnp.dot(x_ref[...], wih_ref[...], preferred_element_type=jnp.float32)
        + b_ref[...]
    )

    whh = whh_ref[...]                                   # keep W_hh^T resident

    h = jnp.zeros((Bp, Hp), jnp.float32)
    c = jnp.zeros((Bp, Hp), jnp.float32)

    # ---- fully unrolled recurrence (T is a static trace-time constant) ----
    for t in range(T):
        gates = (xproj_scr[pl.ds(t * Bp, Bp), :]
                 + jnp.dot(h, whh, preferred_element_type=jnp.float32))
        # lane-aligned whole-vreg gate slices (Hp = 128)
        i_g = jax.nn.sigmoid(gates[:, 0 * Hp:1 * Hp])
        f_g = jax.nn.sigmoid(gates[:, 1 * Hp:2 * Hp])
        g_g = jnp.tanh(gates[:, 2 * Hp:3 * Hp])
        o_g = jax.nn.sigmoid(gates[:, 3 * Hp:4 * Hp])
        c = f_g * c + i_g * g_g
        h = o_g * jnp.tanh(c)

    # ---- fc head on the last hidden state (lane-dense padded output) ----
    out = jnp.dot(h, fcw_ref[...], preferred_element_type=jnp.float32) + fcb_ref[...]
    out_ref[...] = out.astype(out_ref.dtype)


def _round_up(n, m):
    return ((n + m - 1) // m) * m


def lstm_model_forward(x, params):
    """x: (B, T, I) float32. Returns (B, 1) float32."""
    f32 = jnp.float32
    B, T, I = x.shape
    w_ih, w_hh, b_ih, b_hh, fc_w, fc_b = params
    H = w_hh.shape[1]
    O = fc_w.shape[0]

    Hp = max(128, _round_up(H, 8))      # lane-aligned gate blocks
    Bp = _round_up(max(B, 8), 8)        # full sublane group
    Op = 128                            # lane-dense output store

    # x: (B, T, I) -> time-major, batch-padded, flattened to (T*Bp, I)
    x_tm = jnp.transpose(x.astype(f32), (1, 0, 2))
    x_tm = jnp.pad(x_tm, ((0, 0), (0, Bp - B), (0, 0))).reshape(T * Bp, I)

    # W_ih: (4H, I) -> (I, 4*Hp), gate-blocked, each gate zero-padded H -> Hp
    wih = jnp.transpose(w_ih.astype(f32).reshape(4, H, I), (2, 0, 1))      # (I, 4, H)
    wih = jnp.pad(wih, ((0, 0), (0, 0), (0, Hp - H))).reshape(I, 4 * Hp)

    # W_hh: (4H, H) -> (Hp, 4*Hp)
    whh = jnp.transpose(w_hh.astype(f32).reshape(4, H, H), (2, 0, 1))      # (H_in, 4, H_out)
    whh = jnp.pad(whh, ((0, Hp - H), (0, 0), (0, Hp - H))).reshape(Hp, 4 * Hp)

    # bias: (4H,) -> (1, 4*Hp)
    b = (b_ih + b_hh).astype(f32).reshape(4, H)
    b = jnp.pad(b, ((0, 0), (0, Hp - H))).reshape(1, 4 * Hp)

    # fc: (O, H) -> (Hp, Op); (O,) -> (1, Op)
    fcw = jnp.pad(jnp.transpose(fc_w.astype(f32)), ((0, Hp - H), (0, Op - O)))
    fcb = jnp.pad(fc_b.astype(f32).reshape(1, O), ((0, 0), (0, Op - O)))

    out_padded = pl.pallas_call(
        lstm_kernel,
        out_shape=jax.ShapeDtypeStruct((Bp, Op), f32),
        grid_spec=pltpu.PrefetchScalarGridSpec(
            num_scalar_prefetch=0,
            grid=(1,),
            in_specs=[
                pl.BlockSpec((T * Bp, I), lambda i: (0, 0)),       # x (time-major, flat)
                pl.BlockSpec((I, 4 * Hp), lambda i: (0, 0)),       # W_ih^T
                pl.BlockSpec((Hp, 4 * Hp), lambda i: (0, 0)),      # W_hh^T
                pl.BlockSpec((1, 4 * Hp), lambda i: (0, 0)),       # bias
                pl.BlockSpec((Hp, Op), lambda i: (0, 0)),          # fc_w^T
                pl.BlockSpec((1, Op), lambda i: (0, 0)),           # fc_b
            ],
            out_specs=pl.BlockSpec((Bp, Op), lambda i: (0, 0)),
            scratch_shapes=[
                pltpu.VMEM((T * Bp, 4 * Hp), f32),                 # hoisted x-projection
            ],
        ),
        compiler_params=pltpu.CompilerParams(
            dimension_semantics=("arbitrary",)),
    )(x_tm, wih, whh, b, fcw, fcb)

    return out_padded[:B, :O]


def lstm_model_reference(x, params):
    """Pure-JAX reference of the same forward pass (for verification)."""
    w_ih, w_hh, b_ih, b_hh, fc_w, fc_b = params
    B = x.shape[0]
    H = w_hh.shape[1]
    h0 = jnp.zeros((B, H), jnp.float32)
    c0 = jnp.zeros((B, H), jnp.float32)

    def step(carry, x_t):
        h, c = carry
        gates = x_t @ w_ih.T + h @ w_hh.T + b_ih + b_hh
        i_g = jax.nn.sigmoid(gates[:, 0 * H:1 * H])
        f_g = jax.nn.sigmoid(gates[:, 1 * H:2 * H])
        g_g = jnp.tanh(gates[:, 2 * H:3 * H])
        o_g = jax.nn.sigmoid(gates[:, 3 * H:4 * H])
        c_new = f_g * c + i_g * g_g
        h_new = o_g * jnp.tanh(c_new)
        return (h_new, c_new), None

    (h_last, _), _ = lax.scan(step, (h0, c0), jnp.swapaxes(x, 0, 1))
    return h_last @ fc_w.T + fc_b


def init_params(key, input_size, hidden_size, output_size):
    """Deterministic init mimicking PyTorch's uniform(-1/sqrt(H), 1/sqrt(H))."""
    ks = jax.random.split(key, 6)
    bound = 1.0 / jnp.sqrt(hidden_size)
    u = lambda k, shape: jax.random.uniform(
        k, shape, jnp.float32, minval=-bound, maxval=bound)
    w_ih = u(ks[0], (4 * hidden_size, input_size))
    w_hh = u(ks[1], (4 * hidden_size, hidden_size))
    b_ih = u(ks[2], (4 * hidden_size,))
    b_hh = u(ks[3], (4 * hidden_size,))
    fc_w = u(ks[4], (output_size, hidden_size))
    fc_b = u(ks[5], (output_size,))
    return (w_ih, w_hh, b_ih, b_hh, fc_w, fc_b)


if __name__ == "__main__":
    B, T, I, H, O = 4, 8, 16, 50, 1   # hidden_size=50 as in the module

    key = jax.random.PRNGKey(0)
    kx, kp = jax.random.split(key)
    x = jax.random.normal(kx, (B, T, I), jnp.float32)
    params = init_params(kp, I, H, O)

    out = lstm_model_forward(x, params)
    out = jax.block_until_ready(out)

    ref = lstm_model_reference(x, params)
    assert out.shape == (B, O)
    assert jnp.allclose(out, ref, atol=1e-5, rtol=1e-5), (out, ref)

    print("KERNEL_OK")
</pallas_src>

<mosaic_0001>
module attributes {stable_mosaic.version = 11 : i64} {
  func.func @lstm_kernel(%arg0: i32, %arg1: memref<64x16xf32, #tpu.memory_space<vmem>>, %arg2: memref<16x512xf32, #tpu.memory_space<vmem>>, %arg3: memref<128x512xf32, #tpu.memory_space<vmem>>, %arg4: memref<1x512xf32, #tpu.memory_space<vmem>>, %arg5: memref<128x128xf32, #tpu.memory_space<vmem>>, %arg6: memref<1x128xf32, #tpu.memory_space<vmem>>, %arg7: memref<8x128xf32, #tpu.memory_space<vmem>>, %arg8: memref<64x512xf32, #tpu.memory_space<vmem>>) attributes {dimension_semantics = [#tpu.dimension_semantics<arbitrary>], iteration_bounds = array<i64: 1>, scalar_prefetch = 0 : i64, scratch_operands = 1 : i64, tpu.core_type = #tpu.core_type<tc>, window_params = [{pipeline_mode = #tpu.pipeline_mode<synchronous>, transform_indices = @transform_0, window_bounds = array<i64: 64, 16>}, {pipeline_mode = #tpu.pipeline_mode<synchronous>, transform_indices = @transform_1, window_bounds = array<i64: 16, 512>}, {pipeline_mode = #tpu.pipeline_mode<synchronous>, transform_indices = @transform_2, window_bounds = array<i64: 128, 512>}, {pipeline_mode = #tpu.pipeline_mode<synchronous>, transform_indices = @transform_3, window_bounds = array<i64: 1, 512>}, {pipeline_mode = #tpu.pipeline_mode<synchronous>, transform_indices = @transform_4, window_bounds = array<i64: 128, 128>}, {pipeline_mode = #tpu.pipeline_mode<synchronous>, transform_indices = @transform_5, window_bounds = array<i64: 1, 128>}, {pipeline_mode = #tpu.pipeline_mode<synchronous>, transform_indices = @transform_6, window_bounds = array<i64: 8, 128>}]} {
    %c0 = arith.constant 0 : index
    %c0_0 = arith.constant 0 : index
    %0 = vector.load %arg1[%c0, %c0_0] : memref<64x16xf32, #tpu.memory_space<vmem>>, vector<64x16xf32>
    %c0_1 = arith.constant 0 : index
    %c0_2 = arith.constant 0 : index
    %1 = vector.load %arg2[%c0_1, %c0_2] : memref<16x512xf32, #tpu.memory_space<vmem>>, vector<16x512xf32>
    %cst = arith.constant dense<0.000000e+00> : vector<64x512xf32>
    %2 = tpu.matmul %0, %1, %cst {dimension_numbers = #tpu.dot_dimension_numbers<[1], [0], [0], [1], [0, 0, 1, 1], [], []>} : vector<64x16xf32>, vector<16x512xf32>, vector<64x512xf32> -> vector<64x512xf32>
    %c0_3 = arith.constant 0 : index
    %c0_4 = arith.constant 0 : index
    %3 = vector.load %arg4[%c0_3, %c0_4] : memref<1x512xf32, #tpu.memory_space<vmem>>, vector<1x512xf32>
    %4 = vector.broadcast %3 : vector<1x512xf32> to vector<64x512xf32>
    %5 = arith.addf %2, %4 : vector<64x512xf32>
    %c0_5 = arith.constant 0 : index
    %c0_6 = arith.constant 0 : index
    %6 = vector.load %arg8[%c0_5, %c0_6] : memref<64x512xf32, #tpu.memory_space<vmem>>, vector<64x512xf32>
    tpu.vector_store %arg8[%c0_5, %c0_6], %5 {strides = array<i32>} : memref<64x512xf32, #tpu.memory_space<vmem>>, vector<64x512xf32>,
    %c0_7 = arith.constant 0 : index
    %c0_8 = arith.constant 0 : index
    %7 = vector.load %arg3[%c0_7, %c0_8] : memref<128x512xf32, #tpu.memory_space<vmem>>, vector<128x512xf32>
    %cst_9 = arith.constant 0.000000e+00 : f32
    %8 = vector.broadcast %cst_9 : f32 to vector<8x128xf32>
    %cst_10 = arith.constant 0.000000e+00 : f32
    %9 = vector.broadcast %cst_10 : f32 to vector<8x128xf32>
    %c0_11 = arith.constant 0 : index
    %c0_12 = arith.constant 0 : index
    %10 = vector.load %arg8[%c0_11, %c0_12] : memref<64x512xf32, #tpu.memory_space<vmem>>, vector<8x512xf32>
    %cst_13 = arith.constant dense<0.000000e+00> : vector<8x512xf32>
    %11 = tpu.matmul %8, %7, %cst_13 {dimension_numbers = #tpu.dot_dimension_numbers<[1], [0], [0], [1], [0, 0, 1, 1], [], []>} : vector<8x128xf32>, vector<128x512xf32>, vector<8x512xf32> -> vector<8x512xf32>
    %12 = arith.addf %10, %11 : vector<8x512xf32>
    %13 = vector.extract_strided_slice %12 {offsets = [0, 0], sizes = [8, 128], strides = [1, 1]} : vector<8x512xf32> to vector<8x128xf32>
    %14 = arith.negf %13 : vector<8x128xf32>
    %15 = math.exp %14 : vector<8x128xf32>
    %cst_14 = arith.constant 1.000000e+00 : f32
    %16 = vector.broadcast %cst_14 : f32 to vector<8x128xf32>
    %17 = arith.addf %16, %15 : vector<8x128xf32>
    %18 = arith.divf %16, %17 : vector<8x128xf32>
    %19 = vector.extract_strided_slice %12 {offsets = [0, 128], sizes = [8, 128], strides = [1, 1]} : vector<8x512xf32> to vector<8x128xf32>
    %20 = arith.negf %19 : vector<8x128xf32>
    %21 = math.exp %20 : vector<8x128xf32>
    %cst_15 = arith.constant 1.000000e+00 : f32
    %22 = vector.broadcast %cst_15 : f32 to vector<8x128xf32>
    %23 = arith.addf %22, %21 : vector<8x128xf32>
    %24 = arith.divf %22, %23 : vector<8x128xf32>
    %25 = vector.extract_strided_slice %12 {offsets = [0, 256], sizes = [8, 128], strides = [1, 1]} : vector<8x512xf32> to vector<8x128xf32>
    %26 = math.tanh %25 : vector<8x128xf32>
    %27 = vector.extract_strided_slice %12 {offsets = [0, 384], sizes = [8, 128], strides = [1, 1]} : vector<8x512xf32> to vector<8x128xf32>
    %28 = arith.negf %27 : vector<8x128xf32>
    %29 = math.exp %28 : vector<8x128xf32>
    %cst_16 = arith.constant 1.000000e+00 : f32
    %30 = vector.broadcast %cst_16 : f32 to vector<8x128xf32>
    %31 = arith.addf %30, %29 : vector<8x128xf32>
    %32 = arith.divf %30, %31 : vector<8x128xf32>
    %33 = arith.mulf %24, %9 : vector<8x128xf32>
    %34 = arith.mulf %18, %26 : vector<8x128xf32>
    %35 = arith.addf %33, %34 : vector<8x128xf32>
    %36 = math.tanh %35 : vector<8x128xf32>
    %37 = arith.mulf %32, %36 : vector<8x128xf32>
    %c8 = arith.constant 8 : index
    %c0_17 = arith.constant 0 : index
    %38 = vector.load %arg8[%c8, %c0_17] : memref<64x512xf32, #tpu.memory_space<vmem>>, vector<8x512xf32>
    %cst_18 = arith.constant dense<0.000000e+00> : vector<8x512xf32>
    %39 = tpu.matmul %37, %7, %cst_18 {dimension_numbers = #tpu.dot_dimension_numbers<[1], [0], [0], [1], [0, 0, 1, 1], [], []>} : vector<8x128xf32>, vector<128x512xf32>, vector<8x512xf32> -> vector<8x512xf32>
    %40 = arith.addf %38, %39 : vector<8x512xf32>
    %41 = vector.extract_strided_slice %40 {offsets = [0, 0], sizes = [8, 128], strides = [1, 1]} : vector<8x512xf32> to vector<8x128xf32>
    %42 = arith.negf %41 : vector<8x128xf32>
    %43 = math.exp %42 : vector<8x128xf32>
    %cst_19 = arith.constant 1.000000e+00 : f32
    %44 = vector.broadcast %cst_19 : f32 to vector<8x128xf32>
    %45 = arith.addf %44, %43 : vector<8x128xf32>
    %46 = arith.divf %44, %45 : vector<8x128xf32>
    %47 = vector.extract_strided_slice %40 {offsets = [0, 128], sizes = [8, 128], strides = [1, 1]} : vector<8x512xf32> to vector<8x128xf32>
    %48 = arith.negf %47 : vector<8x128xf32>
    %49 = math.exp %48 : vector<8x128xf32>
    %cst_20 = arith.constant 1.000000e+00 : f32
    %50 = vector.broadcast %cst_20 : f32 to vector<8x128xf32>
    %51 = arith.addf %50, %49 : vector<8x128xf32>
    %52 = arith.divf %50, %51 : vector<8x128xf32>
    %53 = vector.extract_strided_slice %40 {offsets = [0, 256], sizes = [8, 128], strides = [1, 1]} : vector<8x512xf32> to vector<8x128xf32>
    %54 = math.tanh %53 : vector<8x128xf32>
    %55 = vector.extract_strided_slice %40 {offsets = [0, 384], sizes = [8, 128], strides = [1, 1]} : vector<8x512xf32> to vector<8x128xf32>
    %56 = arith.negf %55 : vector<8x128xf32>
    %57 = math.exp %56 : vector<8x128xf32>
    %cst_21 = arith.constant 1.000000e+00 : f32
    %58 = vector.broadcast %cst_21 : f32 to vector<8x128xf32>
    %59 = arith.addf %58, %57 : vector<8x128xf32>
    %60 = arith.divf %58, %59 : vector<8x128xf32>
    %61 = arith.mulf %52, %35 : vector<8x128xf32>
    %62 = arith.mulf %46, %54 : vector<8x128xf32>
    %63 = arith.addf %61, %62 : vector<8x128xf32>
    %64 = math.tanh %63 : vector<8x128xf32>
    %65 = arith.mulf %60, %64 : vector<8x128xf32>
    %c16 = arith.constant 16 : index
    %c0_22 = arith.constant 0 : index
    %66 = vector.load %arg8[%c16, %c0_22] : memref<64x512xf32, #tpu.memory_space<vmem>>, vector<8x512xf32>
    %cst_23 = arith.constant dense<0.000000e+00> : vector<8x512xf32>
    %67 = tpu.matmul %65, %7, %cst_23 {dimension_numbers = #tpu.dot_dimension_numbers<[1], [0], [0], [1], [0, 0, 1, 1], [], []>} : vector<8x128xf32>, vector<128x512xf32>, vector<8x512xf32> -> vector<8x512xf32>
    %68 = arith.addf %66, %67 : vector<8x512xf32>
    %69 = vector.extract_strided_slice %68 {offsets = [0, 0], sizes = [8, 128], strides = [1, 1]} : vector<8x512xf32> to vector<8x128xf32>
    %70 = arith.negf %69 : vector<8x128xf32>
    %71 = math.exp %70 : vector<8x128xf32>
    %cst_24 = arith.constant 1.000000e+00 : f32
    %72 = vector.broadcast %cst_24 : f32 to vector<8x128xf32>
    %73 = arith.addf %72, %71 : vector<8x128xf32>
    %74 = arith.divf %72, %73 : vector<8x128xf32>
    %75 = vector.extract_strided_slice %68 {offsets = [0, 128], sizes = [8, 128], strides = [1, 1]} : vector<8x512xf32> to vector<8x128xf32>
    %76 = arith.negf %75 : vector<8x128xf32>
    %77 = math.exp %76 : vector<8x128xf32>
    %cst_25 = arith.constant 1.000000e+00 : f32
    %78 = vector.broadcast %cst_25 : f32 to vector<8x128xf32>
    %79 = arith.addf %78, %77 : vector<8x128xf32>
    %80 = arith.divf %78, %79 : vector<8x128xf32>
    %81 = vector.extract_strided_slice %68 {offsets = [0, 256], sizes = [8, 128], strides = [1, 1]} : vector<8x512xf32> to vector<8x128xf32>
    %82 = math.tanh %81 : vector<8x128xf32>
    %83 = vector.extract_strided_slice %68 {offsets = [0, 384], sizes = [8, 128], strides = [1, 1]} : vector<8x512xf32> to vector<8x128xf32>
    %84 = arith.negf %83 : vector<8x128xf32>
    %85 = math.exp %84 : vector<8x128xf32>
    %cst_26 = arith.constant 1.000000e+00 : f32
    %86 = vector.broadcast %cst_26 : f32 to vector<8x128xf32>
    %87 = arith.addf %86, %85 : vector<8x128xf32>
    %88 = arith.divf %86, %87 : vector<8x128xf32>
    %89 = arith.mulf %80, %63 : vector<8x128xf32>
    %90 = arith.mulf %74, %82 : vector<8x128xf32>
    %91 = arith.addf %89, %90 : vector<8x128xf32>
    %92 = math.tanh %91 : vector<8x128xf32>
    %93 = arith.mulf %88, %92 : vector<8x128xf32>
    %c24 = arith.constant 24 : index
    %c0_27 = arith.constant 0 : index
    %94 = vector.load %arg8[%c24, %c0_27] : memref<64x512xf32, #tpu.memory_space<vmem>>, vector<8x512xf32>
    %cst_28 = arith.constant dense<0.000000e+00> : vector<8x512xf32>
    %95 = tpu.matmul %93, %7, %cst_28 {dimension_numbers = #tpu.dot_dimension_numbers<[1], [0], [0], [1], [0, 0, 1, 1], [], []>} : vector<8x128xf32>, vector<128x512xf32>, vector<8x512xf32> -> vector<8x512xf32>
    %96 = arith.addf %94, %95 : vector<8x512xf32>
    %97 = vector.extract_strided_slice %96 {offsets = [0, 0], sizes = [8, 128], strides = [1, 1]} : vector<8x512xf32> to vector<8x128xf32>
    %98 = arith.negf %97 : vector<8x128xf32>
    %99 = math.exp %98 : vector<8x128xf32>
    %cst_29 = arith.constant 1.000000e+00 : f32
    %100 = vector.broadcast %cst_29 : f32 to vector<8x128xf32>
    %101 = arith.addf %100, %99 : vector<8x128xf32>
    %102 = arith.divf %100, %101 : vector<8x128xf32>
    %103 = vector.extract_strided_slice %96 {offsets = [0, 128], sizes = [8, 128], strides = [1, 1]} : vector<8x512xf32> to vector<8x128xf32>
    %104 = arith.negf %103 : vector<8x128xf32>
    %105 = math.exp %104 : vector<8x128xf32>
    %cst_30 = arith.constant 1.000000e+00 : f32
    %106 = vector.broadcast %cst_30 : f32 to vector<8x128xf32>
    %107 = arith.addf %106, %105 : vector<8x128xf32>
    %108 = arith.divf %106, %107 : vector<8x128xf32>
    %109 = vector.extract_strided_slice %96 {offsets = [0, 256], sizes = [8, 128], strides = [1, 1]} : vector<8x512xf32> to vector<8x128xf32>
    %110 = math.tanh %109 : vector<8x128xf32>
    %111 = vector.extract_strided_slice %96 {offsets = [0, 384], sizes = [8, 128], strides = [1, 1]} : vector<8x512xf32> to vector<8x128xf32>
    %112 = arith.negf %111 : vector<8x128xf32>
    %113 = math.exp %112 : vector<8x128xf32>
    %cst_31 = arith.constant 1.000000e+00 : f32
    %114 = vector.broadcast %cst_31 : f32 to vector<8x128xf32>
    %115 = arith.addf %114, %113 : vector<8x128xf32>
    %116 = arith.divf %114, %115 : vector<8x128xf32>
    %117 = arith.mulf %108, %91 : vector<8x128xf32>
    %118 = arith.mulf %102, %110 : vector<8x128xf32>
    %119 = arith.addf %117, %118 : vector<8x128xf32>
    %120 = math.tanh %119 : vector<8x128xf32>
    %121 = arith.mulf %116, %120 : vector<8x128xf32>
    %c32 = arith.constant 32 : index
    %c0_32 = arith.constant 0 : index
    %122 = vector.load %arg8[%c32, %c0_32] : memref<64x512xf32, #tpu.memory_space<vmem>>, vector<8x512xf32>
    %cst_33 = arith.constant dense<0.000000e+00> : vector<8x512xf32>
    %123 = tpu.matmul %121, %7, %cst_33 {dimension_numbers = #tpu.dot_dimension_numbers<[1], [0], [0], [1], [0, 0, 1, 1], [], []>} : vector<8x128xf32>, vector<128x512xf32>, vector<8x512xf32> -> vector<8x512xf32>
    %124 = arith.addf %122, %123 : vector<8x512xf32>
    %125 = vector.extract_strided_slice %124 {offsets = [0, 0], sizes = [8, 128], strides = [1, 1]} : vector<8x512xf32> to vector<8x128xf32>
    %126 = arith.negf %125 : vector<8x128xf32>
    %127 = math.exp %126 : vector<8x128xf32>
    %cst_34 = arith.constant 1.000000e+00 : f32
    %128 = vector.broadcast %cst_34 : f32 to vector<8x128xf32>
    %129 = arith.addf %128, %127 : vector<8x128xf32>
    %130 = arith.divf %128, %129 : vector<8x128xf32>
    %131 = vector.extract_strided_slice %124 {offsets = [0, 128], sizes = [8, 128], strides = [1, 1]} : vector<8x512xf32> to vector<8x128xf32>
    %132 = arith.negf %131 : vector<8x128xf32>
    %133 = math.exp %132 : vector<8x128xf32>
    %cst_35 = arith.constant 1.000000e+00 : f32
    %134 = vector.broadcast %cst_35 : f32 to vector<8x128xf32>
    %135 = arith.addf %134, %133 : vector<8x128xf32>
    %136 = arith.divf %134, %135 : vector<8x128xf32>
    %137 = vector.extract_strided_slice %124 {offsets = [0, 256], sizes = [8, 128], strides = [1, 1]} : vector<8x512xf32> to vector<8x128xf32>
    %138 = math.tanh %137 : vector<8x128xf32>
    %139 = vector.extract_strided_slice %124 {offsets = [0, 384], sizes = [8, 128], strides = [1, 1]} : vector<8x512xf32> to vector<8x128xf32>
    %140 = arith.negf %139 : vector<8x128xf32>
    %141 = math.exp %140 : vector<8x128xf32>
    %cst_36 = arith.constant 1.000000e+00 : f32
    %142 = vector.broadcast %cst_36 : f32 to vector<8x128xf32>
    %143 = arith.addf %142, %141 : vector<8x128xf32>
    %144 = arith.divf %142, %143 : vector<8x128xf32>
    %145 = arith.mulf %136, %119 : vector<8x128xf32>
    %146 = arith.mulf %130, %138 : vector<8x128xf32>
    %147 = arith.addf %145, %146 : vector<8x128xf32>
    %148 = math.tanh %147 : vector<8x128xf32>
    %149 = arith.mulf %144, %148 : vector<8x128xf32>
    %c40 = arith.constant 40 : index
    %c0_37 = arith.constant 0 : index
    %150 = vector.load %arg8[%c40, %c0_37] : memref<64x512xf32, #tpu.memory_space<vmem>>, vector<8x512xf32>
    %cst_38 = arith.constant dense<0.000000e+00> : vector<8x512xf32>
    %151 = tpu.matmul %149, %7, %cst_38 {dimension_numbers = #tpu.dot_dimension_numbers<[1], [0], [0], [1], [0, 0, 1, 1], [], []>} : vector<8x128xf32>, vector<128x512xf32>, vector<8x512xf32> -> vector<8x512xf32>
    %152 = arith.addf %150, %151 : vector<8x512xf32>
    %153 = vector.extract_strided_slice %152 {offsets = [0, 0], sizes = [8, 128], strides = [1, 1]} : vector<8x512xf32> to vector<8x128xf32>
    %154 = arith.negf %153 : vector<8x128xf32>
    %155 = math.exp %154 : vector<8x128xf32>
    %cst_39 = arith.constant 1.000000e+00 : f32
    %156 = vector.broadcast %cst_39 : f32 to vector<8x128xf32>
    %157 = arith.addf %156, %155 : vector<8x128xf32>
    %158 = arith.divf %156, %157 : vector<8x128xf32>
    %159 = vector.extract_strided_slice %152 {offsets = [0, 128], sizes = [8, 128], strides = [1, 1]} : vector<8x512xf32> to vector<8x128xf32>
    %160 = arith.negf %159 : vector<8x128xf32>
    %161 = math.exp %160 : vector<8x128xf32>
    %cst_40 = arith.constant 1.000000e+00 : f32
    %162 = vector.broadcast %cst_40 : f32 to vector<8x128xf32>
    %163 = arith.addf %162, %161 : vector<8x128xf32>
    %164 = arith.divf %162, %163 : vector<8x128xf32>
    %165 = vector.extract_strided_slice %152 {offsets = [0, 256], sizes = [8, 128], strides = [1, 1]} : vector<8x512xf32> to vector<8x128xf32>
    %166 = math.tanh %165 : vector<8x128xf32>
    %167 = vector.extract_strided_slice %152 {offsets = [0, 384], sizes = [8, 128], strides = [1, 1]} : vector<8x512xf32> to vector<8x128xf32>
    %168 = arith.negf %167 : vector<8x128xf32>
    %169 = math.exp %168 : vector<8x128xf32>
    %cst_41 = arith.constant 1.000000e+00 : f32
    %170 = vector.broadcast %cst_41 : f32 to vector<8x128xf32>
    %171 = arith.addf %170, %169 : vector<8x128xf32>
    %172 = arith.divf %170, %171 : vector<8x128xf32>
    %173 = arith.mulf %164, %147 : vector<8x128xf32>
    %174 = arith.mulf %158, %166 : vector<8x128xf32>
    %175 = arith.addf %173, %174 : vector<8x128xf32>
    %176 = math.tanh %175 : vector<8x128xf32>
    %177 = arith.mulf %172, %176 : vector<8x128xf32>
    %c48 = arith.constant 48 : index
    %c0_42 = arith.constant 0 : index
    %178 = vector.load %arg8[%c48, %c0_42] : memref<64x512xf32, #tpu.memory_space<vmem>>, vector<8x512xf32>
    %cst_43 = arith.constant dense<0.000000e+00> : vector<8x512xf32>
    %179 = tpu.matmul %177, %7, %cst_43 {dimension_numbers = #tpu.dot_dimension_numbers<[1], [0], [0], [1], [0, 0, 1, 1], [], []>} : vector<8x128xf32>, vector<128x512xf32>, vector<8x512xf32> -> vector<8x512xf32>
    %180 = arith.addf %178, %179 : vector<8x512xf32>
    %181 = vector.extract_strided_slice %180 {offsets = [0, 0], sizes = [8, 128], strides = [1, 1]} : vector<8x512xf32> to vector<8x128xf32>
    %182 = arith.negf %181 : vector<8x128xf32>
    %183 = math.exp %182 : vector<8x128xf32>
    %cst_44 = arith.constant 1.000000e+00 : f32
    %184 = vector.broadcast %cst_44 : f32 to vector<8x128xf32>
    %185 = arith.addf %184, %183 : vector<8x128xf32>
    %186 = arith.divf %184, %185 : vector<8x128xf32>
    %187 = vector.extract_strided_slice %180 {offsets = [0, 128], sizes = [8, 128], strides = [1, 1]} : vector<8x512xf32> to vector<8x128xf32>
    %188 = arith.negf %187 : vector<8x128xf32>
    %189 = math.exp %188 : vector<8x128xf32>
    %cst_45 = arith.constant 1.000000e+00 : f32
    %190 = vector.broadcast %cst_45 : f32 to vector<8x128xf32>
    %191 = arith.addf %190, %189 : vector<8x128xf32>
    %192 = arith.divf %190, %191 : vector<8x128xf32>
    %193 = vector.extract_strided_slice %180 {offsets = [0, 256], sizes = [8, 128], strides = [1, 1]} : vector<8x512xf32> to vector<8x128xf32>
    %194 = math.tanh %193 : vector<8x128xf32>
    %195 = vector.extract_strided_slice %180 {offsets = [0, 384], sizes = [8, 128], strides = [1, 1]} : vector<8x512xf32> to vector<8x128xf32>
    %196 = arith.negf %195 : vector<8x128xf32>
    %197 = math.exp %196 : vector<8x128xf32>
    %cst_46 = arith.constant 1.000000e+00 : f32
    %198 = vector.broadcast %cst_46 : f32 to vector<8x128xf32>
    %199 = arith.addf %198, %197 : vector<8x128xf32>
    %200 = arith.divf %198, %199 : vector<8x128xf32>
    %201 = arith.mulf %192, %175 : vector<8x128xf32>
    %202 = arith.mulf %186, %194 : vector<8x128xf32>
    %203 = arith.addf %201, %202 : vector<8x128xf32>
    %204 = math.tanh %203 : vector<8x128xf32>
    %205 = arith.mulf %200, %204 : vector<8x128xf32>
    %c56 = arith.constant 56 : index
    %c0_47 = arith.constant 0 : index
    %206 = vector.load %arg8[%c56, %c0_47] : memref<64x512xf32, #tpu.memory_space<vmem>>, vector<8x512xf32>
    %cst_48 = arith.constant dense<0.000000e+00> : vector<8x512xf32>
    %207 = tpu.matmul %205, %7, %cst_48 {dimension_numbers = #tpu.dot_dimension_numbers<[1], [0], [0], [1], [0, 0, 1, 1], [], []>} : vector<8x128xf32>, vector<128x512xf32>, vector<8x512xf32> -> vector<8x512xf32>
    %208 = arith.addf %206, %207 : vector<8x512xf32>
    %209 = vector.extract_strided_slice %208 {offsets = [0, 0], sizes = [8, 128], strides = [1, 1]} : vector<8x512xf32> to vector<8x128xf32>
    %210 = arith.negf %209 : vector<8x128xf32>
    %211 = math.exp %210 : vector<8x128xf32>
    %cst_49 = arith.constant 1.000000e+00 : f32
    %212 = vector.broadcast %cst_49 : f32 to vector<8x128xf32>
    %213 = arith.addf %212, %211 : vector<8x128xf32>
    %214 = arith.divf %212, %213 : vector<8x128xf32>
    %215 = vector.extract_strided_slice %208 {offsets = [0, 128], sizes = [8, 128], strides = [1, 1]} : vector<8x512xf32> to vector<8x128xf32>
    %216 = arith.negf %215 : vector<8x128xf32>
    %217 = math.exp %216 : vector<8x128xf32>
    %cst_50 = arith.constant 1.000000e+00 : f32
    %218 = vector.broadcast %cst_50 : f32 to vector<8x128xf32>
    %219 = arith.addf %218, %217 : vector<8x128xf32>
    %220 = arith.divf %218, %219 : vector<8x128xf32>
    %221 = vector.extract_strided_slice %208 {offsets = [0, 256], sizes = [8, 128], strides = [1, 1]} : vector<8x512xf32> to vector<8x128xf32>
    %222 = math.tanh %221 : vector<8x128xf32>
    %223 = vector.extract_strided_slice %208 {offsets = [0, 384], sizes = [8, 128], strides = [1, 1]} : vector<8x512xf32> to vector<8x128xf32>
    %224 = arith.negf %223 : vector<8x128xf32>
    %225 = math.exp %224 : vector<8x128xf32>
    %cst_51 = arith.constant 1.000000e+00 : f32
    %226 = vector.broadcast %cst_51 : f32 to vector<8x128xf32>
    %227 = arith.addf %226, %225 : vector<8x128xf32>
    %228 = arith.divf %226, %227 : vector<8x128xf32>
    %229 = arith.mulf %220, %203 : vector<8x128xf32>
    %230 = arith.mulf %214, %222 : vector<8x128xf32>
    %231 = arith.addf %229, %230 : vector<8x128xf32>
    %232 = math.tanh %231 : vector<8x128xf32>
    %233 = arith.mulf %228, %232 : vector<8x128xf32>
    %c0_52 = arith.constant 0 : index
    %c0_53 = arith.constant 0 : index
    %234 = vector.load %arg5[%c0_52, %c0_53] : memref<128x128xf32, #tpu.memory_space<vmem>>, vector<128x128xf32>
    %cst_54 = arith.constant dense<0.000000e+00> : vector<8x128xf32>
    %235 = tpu.matmul %233, %234, %cst_54 {dimension_numbers = #tpu.dot_dimension_numbers<[1], [0], [0], [1], [0, 0, 1, 1], [], []>} : vector<8x128xf32>, vector<128x128xf32>, vector<8x128xf32> -> vector<8x128xf32>
    %c0_55 = arith.constant 0 : index
    %c0_56 = arith.constant 0 : index
    %236 = vector.load %arg6[%c0_55, %c0_56] : memref<1x128xf32, #tpu.memory_space<vmem>>, vector<1x128xf32>
    %237 = vector.broadcast %236 : vector<1x128xf32> to vector<8x128xf32>
    %238 = arith.addf %235, %237 : vector<8x128xf32>
    %c0_57 = arith.constant 0 : index
    %c0_58 = arith.constant 0 : index
    %239 = vector.load %arg7[%c0_57, %c0_58] : memref<8x128xf32, #tpu.memory_space<vmem>>, vector<8x128xf32>
    tpu.vector_store %arg7[%c0_57, %c0_58], %238 {strides = array<i32>} : memref<8x128xf32, #tpu.memory_space<vmem>>, vector<8x128xf32>,
    return
  }
  func.func @transform_0(%arg0: i32) -> (i32, i32) {
    %c0_i32 = arith.constant 0 : i32
    %c0_i32_0 = arith.constant 0 : i32
    %c0_i32_1 = arith.constant 0 : i32
    return %c0_i32, %c0_i32_0 : i32, i32
  }
  func.func @transform_1(%arg0: i32) -> (i32, i32) {
    %c0_i32 = arith.constant 0 : i32
    %c0_i32_0 = arith.constant 0 : i32
    %c0_i32_1 = arith.constant 0 : i32
    return %c0_i32, %c0_i32_0 : i32, i32
  }
  func.func @transform_2(%arg0: i32) -> (i32, i32) {
    %c0_i32 = arith.constant 0 : i32
    %c0_i32_0 = arith.constant 0 : i32
    %c0_i32_1 = arith.constant 0 : i32
    return %c0_i32, %c0_i32_0 : i32, i32
  }
  func.func @transform_3(%arg0: i32) -> (i32, i32) {
    %c0_i32 = arith.constant 0 : i32
    %c0_i32_0 = arith.constant 0 : i32
    %c0_i32_1 = arith.constant 0 : i32
    return %c0_i32, %c0_i32_0 : i32, i32
  }
  func.func @transform_4(%arg0: i32) -> (i32, i32) {
    %c0_i32 = arith.constant 0 : i32
    %c0_i32_0 = arith.constant 0 : i32
    %c0_i32_1 = arith.constant 0 : i32
    return %c0_i32, %c0_i32_0 : i32, i32
  }
  func.func @transform_5(%arg0: i32) -> (i32, i32) {
    %c0_i32 = arith.constant 0 : i32
    %c0_i32_0 = arith.constant 0 : i32
    %c0_i32_1 = arith.constant 0 : i32
    return %c0_i32, %c0_i32_0 : i32, i32
  }
  func.func @transform_6(%arg0: i32) -> (i32, i32) {
    %c0_i32 = arith.constant 0 : i32
    %c0_i32_0 = arith.constant 0 : i32
    %c0_i32_1 = arith.constant 0 : i32
    return %c0_i32, %c0_i32_0 : i32, i32
  }
}

</mosaic_0001>

<bundles_post_ra>
// kernel: tpu_custom_call.1
= control target key start
LH: loop header
LB: loop body
LE: loop exit
PB: predicated region body
PF: predicated region fallthrough
CT: control target
= control target key end

     0   :  { %11 = vsyncpa [#allocation4], 0  ;;  %s3385_s0 = inlined_call_operand.vmem [shape: f32[64,16], index: 0, kind: input, shape index: {}]   ;;  %s3386_s1 = inlined_call_operand.vmem [shape: f32[16,512], index: 1, kind: input, shape index: {}]   ;;  %s3387_s2 = inlined_call_operand.hbm [shape: f32[128,512], index: 2, kind: input, shape index: {}]   ;;  %s3388_s3 = inlined_call_operand.vmem [shape: f32[1,512], index: 3, kind: input, shape index: {}]   ;;  %s3389_s4 = inlined_call_operand.hbm [shape: f32[128,128], index: 4, kind: input, shape index: {}]   ;;  %s3390_s5 = inlined_call_operand.vmem [shape: f32[1,128], index: 5, kind: input, shape index: {}]   ;;  %s3391_s6 = inlined_call_operand.hbm [shape: f32[8,128], index: 6, kind: output, shape index: {}]  }
   0x1   :  { %12 = vsyncpa [#allocation7], 0 }
   0x2   :  { %13 = vsyncpa [#allocation5], 0  ;;  %s2299_s21 = smov [#allocation3]  }
   0x3   :  { %s23_s22 = sshll.u32 %s2299_s21, 4  ;;  %s24_s22 = int_to_ptr.vmem [resolvable:$true] %s23_s22 }
   0x4   :  { %s2241_s23 = scalar_lea.vmem %s24_s22, 8192  ;;  %p2246_p1 = scmp.lt.s32.totalorder %s24_s22, %s24_s22 }
   0x5   :  { %p2242_p0 = scmp.ne.s32.totalorder %s24_s22, %s2241_s23  ;;  %p2247_p2 = scmp.lt.s32.totalorder %s2241_s23, %s2241_s23 }
   0x7   :  { %p2248_p3 = por %p2247_p2, %p2246_p1 }
   0x9   :  { %p2249_p4 = pnand %p2248_p3, %p2242_p0 }
   0xb   :  { %2252 = shalt.err (!%p2249_p4)
}
   0xc   :  { %s2300_s24 = smov 512   ;;  %s2301_s25 = smov 32  }
   0xd   :  { %29 = dma.hbm_to_vmem [thread:$0]  %s3387_s2, 8192, %s24_s22, [#allocation4], %s2300_s24, %s2300_s24, %s2301_s25  }
   0xe   :  { %s2302_s28 = smov [#allocation6]  }
   0xf   :  { %s37_s29 = sshll.u32 %s2302_s28, 4  ;;  %s38_s29 = int_to_ptr.vmem [resolvable:$true] %s37_s29 }
  0x10   :  { %s2261_s30 = scalar_lea.vmem %s38_s29, 2048  ;;  %p2266_p6 = scmp.lt.s32.totalorder %s38_s29, %s38_s29 }
  0x11   :  { %p2262_p5 = scmp.ne.s32.totalorder %s38_s29, %s2261_s30  ;;  %p2267_p7 = scmp.lt.s32.totalorder %s2261_s30, %s2261_s30 }
  0x13   :  { %p2268_p8 = por %p2267_p7, %p2266_p6 }
  0x15   :  { %p2269_p9 = pnand %p2268_p8, %p2262_p5 }
  0x17   :  { %2272 = shalt.err (!%p2269_p9)
}
  0x18   :  { %s2303_s7 = smov 128   ;;  %s2304_s8 = smov 8  }
  0x19   :  { %43 = dma.hbm_to_vmem [thread:$0]  %s3389_s4, 2048, %s38_s29, [#allocation7], %s2303_s7, %s2303_s7, %s2304_s8  }
  0x1a   :  { %2293 = dma.done.wait [#allocation4], 8192  }
  0x1b   :  { %2294 = vsyncadd [#allocation4], 4294959104 }
  0x1c   :  { %2295 = dma.done.wait [#allocation7], 2048  }
  0x1d   :  { %2296 = vsyncadd [#allocation7], 4294965248  ;;  %v3392_v0 = vmov 0.0   ;;  %v65_v1 = vld [vmem:[%s3386_s1 + $0x28] sm:$0xff]  ;;  %v67_v2 = vld [vmem:[%s3386_s1 + $0x38] sm:$0xff]  ;;  %vm90_vm0 = vcmask 130048  }
  0x1e   :  { %179 = vmatprep.mubr.f32.mxu0 %v3392_v0  ;;  %292 = vmatprep.mubr.f32.mxu1 %v3392_v0  ;;  %v64_v3 = vld [vmem:[%s3386_s1 + $0x20] sm:$0xff]  ;;  %v66_v4 = vld [vmem:[%s3386_s1 + $0x30] sm:$0xff]  ;;  %v61_v5 = vld [vmem:[%s3386_s1 + $0x8] sm:$0xff]  ;;  %vm2306_vm1 = vmmov 0   ;;  %s2307_s16 = smov [#allocation8]  }
  0x1f   :  { %143 = vmatprep.subr.mxu0 %v65_v1  ;;  %256 = vmatprep.subr.mxu1 %v67_v2  ;;  %v63_v6 = vld [vmem:[%s3386_s1 + $0x18] sm:$0xff]  ;;  %v60_v7 = vld [vmem:[%s3386_s1] sm:$0xff]  ;;  %v62_v8 = vld [vmem:[%s3386_s1 + $0x10] sm:$0xff]  ;;  %s1929_s17 = sshll.u32 %s2307_s16, 4  ;;  %s1930_s17 = int_to_ptr.vmem [resolvable:$true] %s1929_s17 }
  0x20   :  { %144 = vmatpush1.msra.mxu0 %v64_v3  ;;  %257 = vmatpush1.msra.mxu1 %v66_v4  ;;  %v52_v9 = vld [vmem:[%s3385_s0] sm:$0xff]  ;;  %v2378_v10 = vld [vmem:[#allocation3 + $0x1e8] sm:$0xff]  ;;  %v2380_v11 = vld [vmem:[#allocation3 + $0x1f8] sm:$0xff]  ;;  %s2273_s18 = scalar_lea.vmem %s1930_s17, 128  ;;  %p2278_p11 = scmp.lt.s32.totalorder %s1930_s17, %s1930_s17 }
  0x21   :  { %145 = vmatprep.subr.mxu0 %v61_v5  ;;  %258 = vmatprep.subr.mxu1 %v63_v6  ;;  %3480 = vst [vmem:[#allocation12_spill] sm:$0xff] %v2378_v10  ;;  %3481 = vst [vmem:[#allocation13_spill] sm:$0xff] %v2380_v11  ;;  %v2382_v12 = vld [vmem:[#allocation3 + $0x1e0] sm:$0xff]  ;;  %v2384_v13 = vld [vmem:[#allocation3 + $0x1f0] sm:$0xff]  ;;  %p2274_p10 = scmp.ne.s32.totalorder %s1930_s17, %s2273_s18  ;;  %p2279_p12 = scmp.lt.s32.totalorder %s2273_s18, %s2273_s18 }
  0x22   :  { %146 = vmatpush1.msra.mxu0 %v60_v7  ;;  %259 = vmatpush1.msra.mxu1 %v62_v8  ;;  %v2388_v14 = vld [vmem:[#allocation3 + $0x1c8] sm:$0xff]  ;;  %v2390_v15 = vld [vmem:[#allocation3 + $0x1d8] sm:$0xff]  ;;  %v2396_v16 = vld [vmem:[#allocation3 + $0x1c0] sm:$0xff] }
  0x23   :  { %1939 = vmatmul.mubr.msk.f32.vlgmr.msra.gmra.mxu0 %vm90_vm0, %v52_v9  ;;  %1947 = vmatmul.mubr.msk.f32.vlgmr.msra.gmra.mxu1 %vm90_vm0, %v52_v9  ;;  %v2398_v17 = vld [vmem:[#allocation3 + $0x1d0] sm:$0xff]  ;;  %v53_v18 = vld [vmem:[%s3385_s0 + $0x8] sm:$0xff]  ;;  %v2409_v20 = vld [vmem:[#allocation3 + $0x1b8] sm:$0xff]  ;;  %p2280_p13 = por %p2279_p12, %p2278_p11 }
  0x24   :  { %441 = vmatprep.subr.mxu0 %v2378_v10  ;;  %512 = vmatprep.subr.mxu1 %v2380_v11  ;;  %v2407_v19 = vld [vmem:[#allocation3 + $0x1a8] sm:$0xff]  ;;  %v2413_v21 = vld [vmem:[#allocation3 + $0x1a0] sm:$0xff]  ;;  %v2415_v22 = vld [vmem:[#allocation3 + $0x1b0] sm:$0xff] }
  0x25   :  { %442 = vmatpush1.msra.mxu0 %v2382_v12  ;;  %513 = vmatpush1.msra.mxu1 %v2384_v13  ;;  %v2419_v23 = vld [vmem:[#allocation3 + $0x188] sm:$0xff]  ;;  %v2421_v24 = vld [vmem:[#allocation3 + $0x198] sm:$0xff]  ;;  %v2427_v25 = vld [vmem:[#allocation3 + $0x180] sm:$0xff]  ;;  %p2281_p0 = pnand %p2280_p13, %p2274_p10 }
  0x26   :  { %443 = vmatprep.subr.mxu0 %v2388_v14  ;;  %514 = vmatprep.subr.mxu1 %v2390_v15  ;;  %v2429_v26 = vld [vmem:[#allocation3 + $0x190] sm:$0xff]  ;;  %v2438_v28 = vld [vmem:[#allocation3 + $0x168] sm:$0xff]  ;;  %v2440_v29 = vld [vmem:[#allocation3 + $0x178] sm:$0xff] }
  0x27   :  { %185 = vmatprep.mubr.f32.mxu0 %v3392_v0  ;;  %298 = vmatprep.mubr.f32.mxu1 %v3392_v0  ;;  %v54_v27 = vld [vmem:[%s3385_s0 + $0x10] sm:$0xff]  ;;  %v2444_v30 = vld [vmem:[#allocation3 + $0x160] sm:$0xff]  ;;  %v2450_v32 = vld [vmem:[#allocation3 + $0x148] sm:$0xff] }
  0x28   :  { %444 = vmatpush1.msra.mxu0 %v2396_v16  ;;  %515 = vmatpush1.msra.mxu1 %v2398_v17  ;;  %v2446_v31 = vld [vmem:[#allocation3 + $0x170] sm:$0xff]  ;;  %v2452_v33 = vld [vmem:[#allocation3 + $0x158] sm:$0xff]  ;;  %v2458_v34 = vld [vmem:[#allocation3 + $0x140] sm:$0xff] }
  0x29   :  { %1940 = vmatmul.mubr.msk.f32.gmra.mxu0 %vm90_vm0, %v53_v18  ;;  %1948 = vmatmul.mubr.msk.f32.gmra.mxu1 %vm90_vm0, %v53_v18  ;;  %v2460_v35 = vld [vmem:[#allocation3 + $0x150] sm:$0xff]  ;;  %v55_v36 = vld [vmem:[%s3385_s0 + $0x18] sm:$0xff]  ;;  %v2469_v37 = vld [vmem:[#allocation3 + $0x128] sm:$0xff] }
  0x2a   :  { %445 = vmatprep.subr.mxu0 %v2407_v19  ;;  %516 = vmatprep.subr.mxu1 %v2409_v20  ;;  %v2471_v38 = vld [vmem:[#allocation3 + $0x138] sm:$0xff]  ;;  %v2475_v39 = vld [vmem:[#allocation3 + $0x120] sm:$0xff]  ;;  %v2477_v40 = vld [vmem:[#allocation3 + $0x130] sm:$0xff] }
  0x2b   :  { %446 = vmatpush1.msra.mxu0 %v2413_v21  ;;  %517 = vmatpush1.msra.mxu1 %v2415_v22  ;;  %v2481_v41 = vld [vmem:[#allocation3 + $0x108] sm:$0xff]  ;;  %v2483_v42 = vld [vmem:[#allocation3 + $0x118] sm:$0xff]  ;;  %v2489_v43 = vld [vmem:[#allocation3 + $0x100] sm:$0xff] }
  0x2c   :  { %447 = vmatprep.subr.mxu0 %v2419_v23  ;;  %518 = vmatprep.subr.mxu1 %v2421_v24  ;;  %v2491_v44 = vld [vmem:[#allocation3 + $0x110] sm:$0xff]  ;;  %v56_v45 = vld [vmem:[%s3385_s0 + $0x20] sm:$0xff]  ;;  %v2500_v46 = vld [vmem:[#allocation3 + $0xe8] sm:$0xff] }
  0x2d   :  { %191 = vmatprep.mubr.f32.mxu0 %v3392_v0  ;;  %304 = vmatprep.mubr.f32.mxu1 %v3392_v0  ;;  %v2502_v47 = vld [vmem:[#allocation3 + $0xf8] sm:$0xff]  ;;  %v2506_v48 = vld [vmem:[#allocation3 + $0xe0] sm:$0xff]  ;;  %v2508_v49 = vld [vmem:[#allocation3 + $0xf0] sm:$0xff] }
  0x2e   :  { %448 = vmatpush1.msra.mxu0 %v2427_v25  ;;  %519 = vmatpush1.msra.mxu1 %v2429_v26  ;;  %v2512_v50 = vld [vmem:[#allocation3 + $0xc8] sm:$0xff]  ;;  %v2514_v51 = vld [vmem:[#allocation3 + $0xd8] sm:$0xff]  ;;  %v2520_v52 = vld [vmem:[#allocation3 + $0xc0] sm:$0xff] }
  0x2f   :  { %1941 = vmatmul.mubr.msk.f32.gmra.mxu0 %vm90_vm0, %v54_v27  ;;  %1949 = vmatmul.mubr.msk.f32.gmra.mxu1 %vm90_vm0, %v54_v27  ;;  %v2522_v53 = vld [vmem:[#allocation3 + $0xd0] sm:$0xff]  ;;  %v57_v54 = vld [vmem:[%s3385_s0 + $0x28] sm:$0xff]  ;;  %v2533_v56 = vld [vmem:[#allocation3 + $0xb8] sm:$0xff] }
  0x30   :  { %449 = vmatprep.subr.mxu0 %v2438_v28  ;;  %520 = vmatprep.subr.mxu1 %v2440_v29  ;;  %v2531_v55 = vld [vmem:[#allocation3 + $0xa8] sm:$0xff]  ;;  %v2537_v57 = vld [vmem:[#allocation3 + $0xa0] sm:$0xff]  ;;  %v2539_v58 = vld [vmem:[#allocation3 + $0xb0] sm:$0xff] }
  0x31   :  { %450 = vmatpush1.msra.mxu0 %v2444_v30  ;;  %521 = vmatpush1.msra.mxu1 %v2446_v31  ;;  %v2543_v59 = vld [vmem:[#allocation3 + $0x88] sm:$0xff]  ;;  %v2545_v60 = vld [vmem:[#allocation3 + $0x98] sm:$0xff]  ;;  %v2551_v61 = vld [vmem:[#allocation3 + $0x80] sm:$0xff] }
  0x32   :  { %451 = vmatprep.subr.mxu0 %v2450_v32  ;;  %522 = vmatprep.subr.mxu1 %v2452_v33  ;;  %3482 = vst [vmem:[#allocation14_spill] sm:$0xff] %v2543_v59  ;;  %3483 = vst [vmem:[#allocation15_spill] sm:$0xff] %v2545_v60  ;;  %v2553_v62 = vld [vmem:[#allocation3 + $0x90] sm:$0xff]  ;;  %v2562_v1 = vld [vmem:[#allocation3 + $0x68] sm:$0xff] }
  0x33   :  { %197 = vmatprep.mubr.f32.mxu0 %v3392_v0  ;;  %310 = vmatprep.mubr.f32.mxu1 %v3392_v0  ;;  %3484 = vst [vmem:[#allocation16_spill] sm:$0xff] %v2551_v61  ;;  %3485 = vst [vmem:[#allocation17_spill] sm:$0xff] %v2553_v62  ;;  %v58_v63 = vld [vmem:[%s3385_s0 + $0x30] sm:$0xff]  ;;  %v2564_v2 = vld [vmem:[#allocation3 + $0x78] sm:$0xff] }
  0x34   :  { %452 = vmatpush1.msra.mxu0 %v2458_v34  ;;  %523 = vmatpush1.msra.mxu1 %v2460_v35  ;;  %3486 = vst [vmem:[#allocation18_spill] sm:$0xff] %v2562_v1  ;;  %3487 = vst [vmem:[#allocation19_spill] sm:$0xff] %v2564_v2  ;;  %v2568_v3 = vld [vmem:[#allocation3 + $0x60] sm:$0xff]  ;;  %v2570_v4 = vld [vmem:[#allocation3 + $0x70] sm:$0xff] }
  0x35   :  { %1942 = vmatmul.mubr.msk.f32.gmra.mxu0 %vm90_vm0, %v55_v36  ;;  %1950 = vmatmul.mubr.msk.f32.gmra.mxu1 %vm90_vm0, %v55_v36  ;;  %3488 = vst [vmem:[#allocation20_spill] sm:$0xff] %v2568_v3  ;;  %3489 = vst [vmem:[#allocation21_spill] sm:$0xff] %v2570_v4  ;;  %v2574_v5 = vld [vmem:[#allocation3 + $0x48] sm:$0xff]  ;;  %v2576_v6 = vld [vmem:[#allocation3 + $0x58] sm:$0xff] }
  0x36   :  { %453 = vmatprep.subr.mxu0 %v2469_v37  ;;  %524 = vmatprep.subr.mxu1 %v2471_v38  ;;  %3490 = vst [vmem:[#allocation22_spill] sm:$0xff] %v2574_v5  ;;  %3491 = vst [vmem:[#allocation23_spill] sm:$0xff] %v2576_v6  ;;  %v2582_v7 = vld [vmem:[#allocation3 + $0x40] sm:$0xff]  ;;  %v2584_v8 = vld [vmem:[#allocation3 + $0x50] sm:$0xff] }
  0x37   :  { %454 = vmatpush1.msra.mxu0 %v2475_v39  ;;  %525 = vmatpush1.msra.mxu1 %v2477_v40  ;;  %3492 = vst [vmem:[#allocation24_spill] sm:$0xff] %v2582_v7  ;;  %3493 = vst [vmem:[#allocation25_spill] sm:$0xff] %v2584_v8  ;;  %v59_v9 = vld [vmem:[%s3385_s0 + $0x38] sm:$0xff]  ;;  %v2593_v18 = vld [vmem:[#allocation3 + $0x28] sm:$0xff] }
  0x38   :  { %455 = vmatprep.subr.mxu0 %v2481_v41  ;;  %526 = vmatprep.subr.mxu1 %v2483_v42  ;;  %3494 = vst [vmem:[#allocation26_spill] sm:$0xff] %v2593_v18  ;;  %v2595_v27 = vld [vmem:[#allocation3 + $0x38] sm:$0xff]  ;;  %v2599_v36 = vld [vmem:[#allocation3 + $0x20] sm:$0xff] }
  0x39   :  { %203 = vmatprep.mubr.f32.mxu0 %v3392_v0  ;;  %316 = vmatprep.mubr.f32.mxu1 %v3392_v0  ;;  %3495 = vst [vmem:[#allocation27_spill] sm:$0xff] %v2595_v27  ;;  %3496 = vst [vmem:[#allocation28_spill] sm:$0xff] %v2599_v36 }
  0x3a   :  { %456 = vmatpush1.msra.mxu0 %v2489_v43  ;;  %527 = vmatpush1.msra.mxu1 %v2491_v44 }
  0x3b   :  { %1943 = vmatmul.mubr.msk.f32.gmra.mxu0 %vm90_vm0, %v56_v45  ;;  %1951 = vmatmul.mubr.msk.f32.gmra.mxu1 %vm90_vm0, %v56_v45  ;;  %v2601_v45 = vld [vmem:[#allocation3 + $0x30] sm:$0xff] }
  0x3c   :  { %457 = vmatprep.subr.mxu0 %v2500_v46  ;;  %528 = vmatprep.subr.mxu1 %v2502_v47  ;;  %3497 = vst [vmem:[#allocation29_spill] sm:$0xff] %v2601_v45 }
  0x3d   :  { %458 = vmatpush1.msra.mxu0 %v2506_v48  ;;  %529 = vmatpush1.msra.mxu1 %v2508_v49 }
  0x3e   :  { %459 = vmatprep.subr.mxu0 %v2512_v50  ;;  %530 = vmatprep.subr.mxu1 %v2514_v51 }
  0x3f   :  { %209 = vmatprep.mubr.f32.mxu0 %v3392_v0  ;;  %322 = vmatprep.mubr.f32.mxu1 %v3392_v0 }
  0x40   :  { %460 = vmatpush1.msra.mxu0 %v2520_v52  ;;  %531 = vmatpush1.msra.mxu1 %v2522_v53 }
  0x41   :  { %1944 = vmatmul.mubr.msk.f32.gmra.mxu0 %vm90_vm0, %v57_v54  ;;  %1952 = vmatmul.mubr.msk.f32.gmra.mxu1 %vm90_vm0, %v57_v54  ;;  %v2605_v54 = vld [vmem:[#allocation3 + $0x8] sm:$0xff] }
  0x42   :  { %461 = vmatprep.subr.mxu0 %v2531_v55  ;;  %532 = vmatprep.subr.mxu1 %v2533_v56  ;;  %3498 = vst [vmem:[#allocation30_spill] sm:$0xff] %v2605_v54 }
  0x43   :  { %462 = vmatpush1.msra.mxu0 %v2537_v57  ;;  %533 = vmatpush1.msra.mxu1 %v2539_v58 }
  0x44   :  { %463 = vmatprep.subr.mxu0 %v2543_v59  ;;  %534 = vmatprep.subr.mxu1 %v2545_v60 }
  0x45   :  { %215 = vmatprep.mubr.f32.mxu0 %v3392_v0  ;;  %328 = vmatprep.mubr.f32.mxu1 %v3392_v0 }
  0x46   :  { %464 = vmatpush1.msra.mxu0 %v2551_v61  ;;  %535 = vmatpush1.msra.mxu1 %v2553_v62 }
  0x47   :  { %1945 = vmatmul.mubr.msk.f32.gmra.mxu0 %vm90_vm0, %v58_v63  ;;  %1953 = vmatmul.mubr.msk.f32.gmra.mxu1 %vm90_vm0, %v58_v63  ;;  %v2607_v63 = vld [vmem:[#allocation3 + $0x18] sm:$0xff] }
  0x48   :  { %465 = vmatprep.subr.mxu0 %v2562_v1  ;;  %536 = vmatprep.subr.mxu1 %v2564_v2  ;;  %3499 = vst [vmem:[#allocation31_spill] sm:$0xff] %v2607_v63 }
  0x49   :  { %466 = vmatpush1.msra.mxu0 %v2568_v3  ;;  %537 = vmatpush1.msra.mxu1 %v2570_v4 }
  0x4a   :  { %467 = vmatprep.subr.mxu0 %v2574_v5  ;;  %538 = vmatprep.subr.mxu1 %v2576_v6 }
  0x4b   :  { %221 = vmatprep.mubr.f32.mxu0 %v3392_v0  ;;  %334 = vmatprep.mubr.f32.mxu1 %v3392_v0  ;;  %v2611_v0 = vld [vmem:[#allocation3] sm:$0xff] }
  0x4c   :  { %468 = vmatpush1.msra.mxu0 %v2582_v7  ;;  %539 = vmatpush1.msra.mxu1 %v2584_v8  ;;  %3500 = vst [vmem:[#allocation32_spill] sm:$0xff] %v2611_v0  ;;  %v2615_v8 = vld [vmem:[#allocation3 + $0x10] sm:$0xff] }
  0x4d   :  { %1946 = vmatmul.mubr.msk.f32.gmra.mxu0 %vm90_vm0, %v59_v9  ;;  %1954 = vmatmul.mubr.msk.f32.gmra.mxu1 %vm90_vm0, %v59_v9  ;;  %3501 = vst [vmem:[#allocation33_spill] sm:$0xff] %v2615_v8  ;;  %v3502_v9 = vmov 0.0  }
  0x4e   :  { %469 = vmatprep.subr.mxu0 %v2593_v18  ;;  %540 = vmatprep.subr.mxu1 %v2595_v27 }
  0x4f   :  { %470 = vmatpush1.msra.mxu0 %v2599_v36  ;;  %541 = vmatpush1.msra.mxu1 %v2601_v45 }
  0x50   :  { %471 = vmatprep.subr.mxu0 %v2605_v54  ;;  %542 = vmatprep.subr.mxu1 %v2607_v63 }
  0x51   :  { %472 = vmatpush1.msra.mxu0 %v2611_v0  ;;  %505 = vmatprep.mubr.f32.mxu0 %v3502_v9 }
  0x52   :  { %543 = vmatpush1.msra.mxu1 %v2615_v8  ;;  %576 = vmatprep.mubr.f32.mxu1 %v3502_v9 }
  0x53   :  { %506 = vmatmul.mubr.f32.vlgmr.msra.gmra.mxu0 %v3502_v9  ;;  %577 = vmatmul.mubr.f32.vlgmr.msra.gmra.mxu1 %v3502_v9 }
  0x54   :  { %615 = vmatprep.subr.mxu0 %v2378_v10  ;;  %686 = vmatprep.subr.mxu1 %v2380_v11 }
  0x55   :  { %616 = vmatpush1.msra.mxu0 %v2382_v12  ;;  %687 = vmatpush1.msra.mxu1 %v2384_v13 }
  0x56   :  { %617 = vmatprep.subr.mxu0 %v2388_v14  ;;  %688 = vmatprep.subr.mxu1 %v2390_v15 }
  0x57   :  { %618 = vmatpush1.msra.mxu0 %v2396_v16  ;;  %689 = vmatpush1.msra.mxu1 %v2398_v17 }
  0x58   :  { %619 = vmatprep.subr.mxu0 %v2407_v19  ;;  %690 = vmatprep.subr.mxu1 %v2409_v20 }
  0x59   :  { %620 = vmatpush1.msra.mxu0 %v2413_v21  ;;  %691 = vmatpush1.msra.mxu1 %v2415_v22 }
  0x5a   :  { %621 = vmatprep.subr.mxu0 %v2419_v23  ;;  %692 = vmatprep.subr.mxu1 %v2421_v24 }
  0x5b   :  { %622 = vmatpush1.msra.mxu0 %v2427_v25  ;;  %693 = vmatpush1.msra.mxu1 %v2429_v26 }
  0x5c   :  { %623 = vmatprep.subr.mxu0 %v2438_v28  ;;  %694 = vmatprep.subr.mxu1 %v2440_v29 }
  0x5d   :  { %624 = vmatpush1.msra.mxu0 %v2444_v30  ;;  %695 = vmatpush1.msra.mxu1 %v2446_v31 }
  0x5e   :  { %625 = vmatprep.subr.mxu0 %v2450_v32  ;;  %696 = vmatprep.subr.mxu1 %v2452_v33 }
  0x5f   :  { %626 = vmatpush1.msra.mxu0 %v2458_v34  ;;  %697 = vmatpush1.msra.mxu1 %v2460_v35 }
  0x60   :  { %627 = vmatprep.subr.mxu0 %v2469_v37  ;;  %698 = vmatprep.subr.mxu1 %v2471_v38 }
  0x61   :  { %628 = vmatpush1.msra.mxu0 %v2475_v39  ;;  %699 = vmatpush1.msra.mxu1 %v2477_v40 }
  0x62   :  { %629 = vmatprep.subr.mxu0 %v2481_v41  ;;  %700 = vmatprep.subr.mxu1 %v2483_v42 }
  0x63   :  { %630 = vmatpush1.msra.mxu0 %v2489_v43  ;;  %701 = vmatpush1.msra.mxu1 %v2491_v44 }
  0x64   :  { %631 = vmatprep.subr.mxu0 %v2500_v46  ;;  %702 = vmatprep.subr.mxu1 %v2502_v47 }
  0x65   :  { %632 = vmatpush1.msra.mxu0 %v2506_v48  ;;  %703 = vmatpush1.msra.mxu1 %v2508_v49 }
  0x66   :  { %633 = vmatprep.subr.mxu0 %v2512_v50  ;;  %704 = vmatprep.subr.mxu1 %v2514_v51 }
  0x67   :  { %634 = vmatpush1.msra.mxu0 %v2520_v52  ;;  %705 = vmatpush1.msra.mxu1 %v2522_v53 }
  0x68   :  { %635 = vmatprep.subr.mxu0 %v2531_v55  ;;  %706 = vmatprep.subr.mxu1 %v2533_v56 }
  0x69   :  { %636 = vmatpush1.msra.mxu0 %v2537_v57  ;;  %707 = vmatpush1.msra.mxu1 %v2539_v58 }
  0x6a   :  { %637 = vmatprep.subr.mxu0 %v2543_v59  ;;  %708 = vmatprep.subr.mxu1 %v2545_v60  ;;  %v3503_v59 = vld [vmem:[#allocation25_spill] sm:$0xff] }
  0x6b   :  { %638 = vmatpush1.msra.mxu0 %v2551_v61  ;;  %709 = vmatpush1.msra.mxu1 %v2553_v62 }
  0x6c   :  { %639 = vmatprep.subr.mxu0 %v2562_v1  ;;  %710 = vmatprep.subr.mxu1 %v2564_v2 }
  0x6d   :  { %640 = vmatpush1.msra.mxu0 %v2568_v3  ;;  %711 = vmatpush1.msra.mxu1 %v2570_v4 }
  0x6e   :  { %641 = vmatprep.subr.mxu0 %v2574_v5  ;;  %712 = vmatprep.subr.mxu1 %v2576_v6 }
  0x6f   :  { %642 = vmatpush1.msra.mxu0 %v2582_v7  ;;  %713 = vmatpush1.msra.mxu1 %v3503_v59 }
  0x70   :  { %643 = vmatprep.subr.mxu0 %v2593_v18  ;;  %714 = vmatprep.subr.mxu1 %v2595_v27  ;;  %v70_v27 = vlaneseq }
  0x71   :  { %644 = vmatpush1.msra.mxu0 %v2599_v36  ;;  %715 = vmatpush1.msra.mxu1 %v2601_v45 }
  0x72   :  { %645 = vmatprep.subr.mxu0 %v2605_v54  ;;  %716 = vmatprep.subr.mxu1 %v2607_v63  ;;  %v71_v36 = vshrl.u32 %v70_v27, 7 }
  0x73   :  { %646 = vmatpush1.msra.mxu0 %v2611_v0  ;;  %679 = vmatprep.mubr.f32.mxu0 %v3502_v9  ;;  %v68_v0 = vld [vmem:[%s3388_s3] sm:$0xf] }
  0x74   :  { %717 = vmatpush1.msra.mxu1 %v2615_v8  ;;  %750 = vmatprep.mubr.f32.mxu1 %v3502_v9  ;;  %v72_v54 = vsub.s32 0, %v71_v36  ;;  %v80_v63 = vsub.s32 2, %v71_v36  ;;  %v76_v9 = vsub.s32 1, %v71_v36 }
  0x75   :  { %789 = vmatprep.subr.mxu0 %v2378_v10  ;;  %860 = vmatprep.subr.mxu1 %v2380_v11  ;;  %v84_v10 = vsub.s32 3, %v71_v36 }
  0x76   :  { %v73_v7 = vrot.slane %v68_v0, %v72_v54  ;;  %v2704_v11 = vrot.slane %v68_v0, %v80_v63  ;;  %v77_v5 = vrot.slane %v68_v0, %v76_v9 }
  0x77   :  { %v2706_v4 = vrot.slane %v68_v0, %v84_v10 }
  0xe3   :  { %v2693_v18 = vpop.f32.mrf.mxu0  ;;  %v2695_v45 = vpop.f32.mrf.mxu1 }
  0xe5   :  { %v2700_v59 = vpop.f32.mrf.mxu0  ;;  %v2702_v8 = vpop.f32.mrf.mxu1 }
  0xe9   :  { %v187_v27 = vpop.f32.mrf.mxu0  ;;  %v300_v6 = vpop.f32.mrf.mxu1 }
  0xea   :  { %v2708_v3 = vadd.f32 %v187_v27, %v73_v7  ;;  %v2711_v2 = vadd.f32 %v300_v6, %v2704_v11 }
  0xeb   :  { %v189_v1 = vpop.f32.mrf.mxu0  ;;  %v302_v62 = vpop.f32.mrf.mxu1 }
  0xec   :  { %3504 = vst [vmem:[#allocation34_spill] sm:$0xff] %v2708_v3  ;;  %3505 = vst [vmem:[#allocation35_spill] sm:$0xff] %v2711_v2  ;;  %v2713_v61 = vadd.f32 %v189_v1, %v77_v5  ;;  %v2716_v60 = vadd.f32 %v302_v62, %v2706_v4 }
  0xee   :  { %3506 = vst [vmem:[#allocation36_spill] sm:$0xff] %v2713_v61  ;;  %3507 = vst [vmem:[#allocation37_spill] sm:$0xff] %v2716_v60 }
  0xef   :  { %v193_v36 = vpop.f32.mrf.mxu0  ;;  %v306_v54 = vpop.f32.mrf.mxu1 }
  0xf0   :  { %v2718_v63 = vadd.f32 %v193_v36, %v73_v7  ;;  %v2721_v9 = vadd.f32 %v306_v54, %v2704_v11 }
  0xf1   :  { %v195_v0 = vpop.f32.mrf.mxu0  ;;  %v308_v10 = vpop.f32.mrf.mxu1 }
  0xf2   :  { %3508 = vst [vmem:[#allocation38_spill] sm:$0xff] %v2718_v63  ;;  %3509 = vst [vmem:[#allocation39_spill] sm:$0xff] %v2721_v9  ;;  %v2723_v27 = vadd.f32 %v195_v0, %v77_v5  ;;  %v2726_v6 = vadd.f32 %v308_v10, %v2706_v4 }
  0xf4   :  { %3510 = vst [vmem:[#allocation40_spill] sm:$0xff] %v2723_v27  ;;  %3511 = vst [vmem:[#allocation41_spill] sm:$0xff] %v2726_v6 }
  0xf5   :  { %v199_v2 = vpop.f32.mrf.mxu0  ;;  %v312_v1 = vpop.f32.mrf.mxu1 }
  0xf6   :  { %v2728_v61 = vadd.f32 %v199_v2, %v73_v7  ;;  %v2731_v62 = vadd.f32 %v312_v1, %v2704_v11 }
  0xf7   :  { %v201_v60 = vpop.f32.mrf.mxu0  ;;  %v314_v36 = vpop.f32.mrf.mxu1 }
  0xf8   :  { %3512 = vst [vmem:[#allocation42_spill] sm:$0xff] %v2728_v61  ;;  %3513 = vst [vmem:[#allocation43_spill] sm:$0xff] %v2731_v62  ;;  %v2733_v63 = vadd.f32 %v201_v60, %v77_v5  ;;  %v2736_v54 = vadd.f32 %v314_v36, %v2706_v4 }
  0xfa   :  { %3514 = vst [vmem:[#allocation44_spill] sm:$0xff] %v2733_v63  ;;  %3515 = vst [vmem:[#allocation45_spill] sm:$0xff] %v2736_v54 }
  0xfb   :  { %v205_v9 = vpop.f32.mrf.mxu0  ;;  %v318_v0 = vpop.f32.mrf.mxu1 }
  0xfc   :  { %v2738_v27 = vadd.f32 %v205_v9, %v73_v7  ;;  %v2741_v10 = vadd.f32 %v318_v0, %v2704_v11 }
  0xfd   :  { %v207_v6 = vpop.f32.mrf.mxu0  ;;  %v320_v2 = vpop.f32.mrf.mxu1 }
  0xfe   :  { %3516 = vst [vmem:[#allocation46_spill] sm:$0xff] %v2738_v27  ;;  %3517 = vst [vmem:[#allocation47_spill] sm:$0xff] %v2741_v10  ;;  %v2743_v61 = vadd.f32 %v207_v6, %v77_v5  ;;  %v2746_v1 = vadd.f32 %v320_v2, %v2706_v4 }
 0x100   :  { %3518 = vst [vmem:[#allocation48_spill] sm:$0xff] %v2743_v61  ;;  %3519 = vst [vmem:[#allocation49_spill] sm:$0xff] %v2746_v1 }
 0x101   :  { %v211_v62 = vpop.f32.mrf.mxu0  ;;  %v324_v60 = vpop.f32.mrf.mxu1 }
 0x102   :  { %v2748_v63 = vadd.f32 %v211_v62, %v73_v7  ;;  %v2751_v36 = vadd.f32 %v324_v60, %v2704_v11 }
 0x103   :  { %v213_v54 = vpop.f32.mrf.mxu0  ;;  %v326_v9 = vpop.f32.mrf.mxu1 }
 0x104   :  { %3520 = vst [vmem:[#allocation50_spill] sm:$0xff] %v2748_v63  ;;  %3521 = vst [vmem:[#allocation51_spill] sm:$0xff] %v2751_v36  ;;  %v2753_v27 = vadd.f32 %v213_v54, %v77_v5  ;;  %v2756_v0 = vadd.f32 %v326_v9, %v2706_v4 }
 0x106   :  { %3522 = vst [vmem:[#allocation52_spill] sm:$0xff] %v2753_v27  ;;  %3523 = vst [vmem:[#allocation53_spill] sm:$0xff] %v2756_v0 }
 0x107   :  { %v217_v10 = vpop.f32.mrf.mxu0  ;;  %v330_v6 = vpop.f32.mrf.mxu1 }
 0x108   :  { %v2758_v61 = vadd.f32 %v217_v10, %v73_v7  ;;  %v2761_v2 = vadd.f32 %v330_v6, %v2704_v11 }
 0x109   :  { %v219_v1 = vpop.f32.mrf.mxu0  ;;  %v332_v62 = vpop.f32.mrf.mxu1 }
 0x10a   :  { %3524 = vst [vmem:[#allocation54_spill] sm:$0xff] %v2758_v61  ;;  %3525 = vst [vmem:[#allocation55_spill] sm:$0xff] %v2761_v2  ;;  %v2763_v63 = vadd.f32 %v219_v1, %v77_v5  ;;  %v2766_v60 = vadd.f32 %v332_v62, %v2706_v4  ;;  %v182_v1 = vadd.f32 %v2693_v18, %v73_v7 }
 0x10b   :  { %v184_v62 = vadd.f32 %v2700_v59, %v77_v5 }
 0x10c   :  { %3526 = vst [vmem:[#allocation56_spill] sm:$0xff] %v2763_v63  ;;  %3527 = vst [vmem:[#allocation57_spill] sm:$0xff] %v2766_v60 }
 0x10d   :  { %v223_v36 = vpop.f32.mrf.mxu0  ;;  %v336_v54 = vpop.f32.mrf.mxu1 }
 0x10e   :  { %v2768_v27 = vadd.f32 %v223_v36, %v73_v7  ;;  %v2771_v9 = vadd.f32 %v336_v54, %v2704_v11 }
 0x10f   :  { %v225_v0 = vpop.f32.mrf.mxu0  ;;  %v338_v10 = vpop.f32.mrf.mxu1 }
 0x110   :  { %3528 = vst [vmem:[#allocation58_spill] sm:$0xff] %v2768_v27  ;;  %3529 = vst [vmem:[#allocation59_spill] sm:$0xff] %v2771_v9  ;;  %v2773_v61 = vadd.f32 %v225_v0, %v77_v5  ;;  %v2776_v6 = vadd.f32 %v338_v10, %v2706_v4  ;;  %v297_v0 = vadd.f32 %v2702_v8, %v2706_v4 }
 0x111   :  { %v295_v10 = vadd.f32 %v2695_v45, %v2704_v11 }
 0x112   :  { %3530 = vst [vmem:[#allocation60_spill] sm:$0xff] %v2773_v61  ;;  %3531 = vst [vmem:[#allocation61_spill] sm:$0xff] %v2776_v6 }
 0x113   :  { %v507_v2 = vpop.f32.mrf.mxu0  ;;  %v578_v27 = vpop.f32.mrf.mxu1 }
 0x114   :  { %v583_v60 = vadd.f32 %v507_v2, %v182_v1  ;;  %v585_v6 = vadd.f32 %v578_v27, %v295_v10  ;;  %v3532_v27 = vld [vmem:[#allocation14_spill] sm:$0xff]  ;;  %v3537_v10 = vld [vmem:[#allocation19_spill] sm:$0xff] }
 0x115   :  { %v509_v63 = vpop.f32.mrf.mxu0  ;;  %v580_v9 = vpop.f32.mrf.mxu1 }
 0x116   :  { %v1955_v3 = vmul.f32 -1.442695, %v583_v60  ;;  %v584_v36 = vadd.f32 %v509_v63, %v184_v62  ;;  %v586_v61 = vadd.f32 %v580_v9, %v297_v0  ;;  %v3536_v0 = vld [vmem:[#allocation18_spill] sm:$0xff] }
 0x118   :  { %2041 = vpow2.f32 %v1955_v3  ;;  %v1956_v54 = vmul.f32 -1.442695, %v584_v36  ;;  %v1957_v7 = vmul.f32 -1.442695, %v586_v61  ;;  %v3534_v36 = vld [vmem:[#allocation16_spill] sm:$0xff] }
 0x11a   :  { %2043 = vpow2.f32 %v1956_v54  ;;  %v3535_v54 = vld [vmem:[#allocation17_spill] sm:$0xff] }
 0x11b   :  { %2045 = vpow2.f32 %v1957_v7  ;;  %v3538_v7 = vld [vmem:[#allocation20_spill] sm:$0xff] }
 0x125   :  { %v2042_v18 = vpop.eup %2041 }
 0x126   :  { %v590_v59 = vadd.f32 1.0, %v2042_v18  ;;  %v3539_v18 = vld [vmem:[#allocation21_spill] sm:$0xff] }
 0x127   :  { %v2044_v5 = vpop.eup %2043 }
 0x128   :  { %2047 = vrcp.f32 %v590_v59  ;;  %v596_v63 = vadd.f32 1.0, %v2044_v5  ;;  %v2046_v3 = vpop.eup %2045  ;;  %v3540_v59 = vld [vmem:[#allocation22_spill] sm:$0xff]  ;;  %v3541_v5 = vld [vmem:[#allocation23_spill] sm:$0xff] }
 0x129   :  { %2049 = vtanh.f32 %v585_v6  ;;  %v603_v62 = vadd.f32 1.0, %v2046_v3  ;;  %v3533_v6 = vld [vmem:[#allocation15_spill] sm:$0xff]  ;;  %v3543_v3 = vld [vmem:[#allocation25_spill] sm:$0xff] }
 0x12a   :  { %2051 = vrcp.f32 %v596_v63  ;;  %v3542_v63 = vld [vmem:[#allocation24_spill] sm:$0xff] }
 0x12b   :  { %2053 = vrcp.f32 %v603_v62  ;;  %v3547_v62 = vld [vmem:[#allocation29_spill] sm:$0xff] }
 0x135   :  { %v2048_v2 = vpop.eup %2047 }
 0x136   :  { %v2050_v60 = vpop.eup %2049 }
 0x137   :  { %v2052_v1 = vpop.eup %2051  ;;  %v607_v8 = vmul.f32 %v2050_v60, %v2048_v2  ;;  %v3544_v2 = vld [vmem:[#allocation26_spill] sm:$0xff]  ;;  %v3545_v60 = vld [vmem:[#allocation27_spill] sm:$0xff] }
 0x138   :  { %v606_v4 = vmul.f32 0.0, %v2052_v1  ;;  %v2054_v11 = vpop.eup %2053  ;;  %v3546_v1 = vld [vmem:[#allocation28_spill] sm:$0xff] }
 0x13a   :  { %v2784_v9 = vadd.f32 %v607_v8, %v606_v4  ;;  %v3548_v4 = vld [vmem:[#allocation30_spill] sm:$0xff]  ;;  %v3549_v8 = vld [vmem:[#allocation31_spill] sm:$0xff] }
 0x13c   :  { %2055 = vtanh.f32 %v2784_v9 }
 0x149   :  { %v2056_v61 = vpop.eup %2055 }
 0x14a   :  { %v610_v45 = vmul.f32 %v2056_v61, %v2054_v11  ;;  %v3550_v11 = vld [vmem:[#allocation32_spill] sm:$0xff]  ;;  %v3551_v61 = vmov 0.0  }
 0x14c   :  { %680 = vmatmul.mubr.f32.vlgmr.msra.gmra.mxu0 %v610_v45  ;;  %751 = vmatmul.mubr.f32.vlgmr.msra.gmra.mxu1 %v610_v45  ;;  %v3552_v45 = vld [vmem:[#allocation33_spill] sm:$0xff] }
 0x14d   :  { %790 = vmatpush1.msra.mxu0 %v2382_v12  ;;  %861 = vmatpush1.msra.mxu1 %v2384_v13 }
 0x14e   :  { %791 = vmatprep.subr.mxu0 %v2388_v14  ;;  %862 = vmatprep.subr.mxu1 %v2390_v15 }
 0x14f   :  { %792 = vmatpush1.msra.mxu0 %v2396_v16  ;;  %863 = vmatpush1.msra.mxu1 %v2398_v17 }
 0x150   :  { %793 = vmatprep.subr.mxu0 %v2407_v19  ;;  %864 = vmatprep.subr.mxu1 %v2409_v20 }
 0x151   :  { %794 = vmatpush1.msra.mxu0 %v2413_v21  ;;  %865 = vmatpush1.msra.mxu1 %v2415_v22 }
 0x152   :  { %795 = vmatprep.subr.mxu0 %v2419_v23  ;;  %866 = vmatprep.subr.mxu1 %v2421_v24 }
 0x153   :  { %796 = vmatpush1.msra.mxu0 %v2427_v25  ;;  %867 = vmatpush1.msra.mxu1 %v2429_v26 }
 0x154   :  { %797 = vmatprep.subr.mxu0 %v2438_v28  ;;  %868 = vmatprep.subr.mxu1 %v2440_v29 }
 0x155   :  { %798 = vmatpush1.msra.mxu0 %v2444_v30  ;;  %869 = vmatpush1.msra.mxu1 %v2446_v31 }
 0x156   :  { %799 = vmatprep.subr.mxu0 %v2450_v32  ;;  %870 = vmatprep.subr.mxu1 %v2452_v33 }
 0x157   :  { %800 = vmatpush1.msra.mxu0 %v2458_v34  ;;  %871 = vmatpush1.msra.mxu1 %v2460_v35 }
 0x158   :  { %801 = vmatprep.subr.mxu0 %v2469_v37  ;;  %872 = vmatprep.subr.mxu1 %v2471_v38 }
 0x159   :  { %802 = vmatpush1.msra.mxu0 %v2475_v39  ;;  %873 = vmatpush1.msra.mxu1 %v2477_v40 }
 0x15a   :  { %803 = vmatprep.subr.mxu0 %v2481_v41  ;;  %874 = vmatprep.subr.mxu1 %v2483_v42 }
 0x15b   :  { %804 = vmatpush1.msra.mxu0 %v2489_v43  ;;  %875 = vmatpush1.msra.mxu1 %v2491_v44 }
 0x15c   :  { %805 = vmatprep.subr.mxu0 %v2500_v46  ;;  %876 = vmatprep.subr.mxu1 %v2502_v47 }
 0x15d   :  { %806 = vmatpush1.msra.mxu0 %v2506_v48  ;;  %877 = vmatpush1.msra.mxu1 %v2508_v49 }
 0x15e   :  { %807 = vmatprep.subr.mxu0 %v2512_v50  ;;  %878 = vmatprep.subr.mxu1 %v2514_v51 }
 0x15f   :  { %808 = vmatpush1.msra.mxu0 %v2520_v52  ;;  %879 = vmatpush1.msra.mxu1 %v2522_v53 }
 0x160   :  { %809 = vmatprep.subr.mxu0 %v2531_v55  ;;  %880 = vmatprep.subr.mxu1 %v2533_v56 }
 0x161   :  { %810 = vmatpush1.msra.mxu0 %v2537_v57  ;;  %881 = vmatpush1.msra.mxu1 %v2539_v58 }
 0x162   :  { %811 = vmatprep.subr.mxu0 %v3532_v27  ;;  %882 = vmatprep.subr.mxu1 %v3533_v6 }
 0x163   :  { %812 = vmatpush1.msra.mxu0 %v3534_v36  ;;  %883 = vmatpush1.msra.mxu1 %v3535_v54 }
 0x164   :  { %813 = vmatprep.subr.mxu0 %v3536_v0  ;;  %884 = vmatprep.subr.mxu1 %v3537_v10  ;;  %v3558_v10 = vld [vmem:[#allocation35_spill] sm:$0xff] }
 0x165   :  { %814 = vmatpush1.msra.mxu0 %v3538_v7  ;;  %885 = vmatpush1.msra.mxu1 %v3539_v18  ;;  %v3557_v7 = vld [vmem:[#allocation37_spill] sm:$0xff] }
 0x166   :  { %815 = vmatprep.subr.mxu0 %v3540_v59  ;;  %886 = vmatprep.subr.mxu1 %v3541_v5 }
 0x167   :  { %816 = vmatpush1.msra.mxu0 %v3542_v63  ;;  %887 = vmatpush1.msra.mxu1 %v3543_v3  ;;  %v3553_v3 = vld [vmem:[#allocation12_spill] sm:$0xff] }
 0x168   :  { %817 = vmatprep.subr.mxu0 %v3544_v2  ;;  %888 = vmatprep.subr.mxu1 %v3545_v60  ;;  %v3554_v2 = vld [vmem:[#allocation13_spill] sm:$0xff] }
 0x169   :  { %818 = vmatpush1.msra.mxu0 %v3546_v1  ;;  %889 = vmatpush1.msra.mxu1 %v3547_v62  ;;  %v3555_v1 = vld [vmem:[#allocation34_spill] sm:$0xff] }
 0x16a   :  { %819 = vmatprep.subr.mxu0 %v3548_v4  ;;  %890 = vmatprep.subr.mxu1 %v3549_v8  ;;  %v3556_v4 = vld [vmem:[#allocation36_spill] sm:$0xff] }
 0x16b   :  { %820 = vmatpush1.msra.mxu0 %v3550_v11  ;;  %853 = vmatprep.mubr.f32.mxu0 %v3551_v61 }
 0x16c   :  { %891 = vmatpush1.msra.mxu1 %v3552_v45  ;;  %924 = vmatprep.mubr.f32.mxu1 %v3551_v61 }
 0x16d   :  { %963 = vmatprep.subr.mxu0 %v3553_v3  ;;  %1034 = vmatprep.subr.mxu1 %v3554_v2 }
 0x20c   :  { %v681_v60 = vpop.f32.mrf.mxu0  ;;  %v752_v8 = vpop.f32.mrf.mxu1 }
 0x20d   :  { %v757_v63 = vadd.f32 %v681_v60, %v3555_v1  ;;  %v759_v61 = vadd.f32 %v752_v8, %v3558_v10 }
 0x20e   :  { %v683_v62 = vpop.f32.mrf.mxu0  ;;  %v754_v18 = vpop.f32.mrf.mxu1 }
 0x20f   :  { %v1958_v5 = vmul.f32 -1.442695, %v757_v63  ;;  %v758_v59 = vadd.f32 %v683_v62, %v3556_v4  ;;  %v760_v45 = vadd.f32 %v754_v18, %v3557_v7 }
 0x211   :  { %2057 = vpow2.f32 %v1958_v5  ;;  %v1959_v11 = vmul.f32 -1.442695, %v758_v59  ;;  %v1960_v0 = vmul.f32 -1.442695, %v760_v45 }
 0x213   :  { %2059 = vpow2.f32 %v1959_v11 }
 0x214   :  { %2061 = vtanh.f32 %v759_v61 }
 0x215   :  { %2063 = vpow2.f32 %v1960_v0 }
 0x21e   :  { %v2058_v3 = vpop.eup %2057 }
 0x21f   :  { %v764_v54 = vadd.f32 1.0, %v2058_v3 }
 0x220   :  { %v2060_v2 = vpop.eup %2059 }
 0x221   :  { %2065 = vrcp.f32 %v764_v54  ;;  %v770_v60 = vadd.f32 1.0, %v2060_v2  ;;  %v2062_v63 = vpop.eup %2061  ;;  %v3580_v54 = vld [vmem:[#allocation40_spill] sm:$0xff]  ;;  %v3581_v2 = vld [vmem:[#allocation41_spill] sm:$0xff] }
 0x222   :  { %v2064_v1 = vpop.eup %2063 }
 0x223   :  { %2067 = vrcp.f32 %v770_v60  ;;  %v777_v4 = vadd.f32 1.0, %v2064_v1 }
 0x225   :  { %2069 = vrcp.f32 %v777_v4 }
 0x22e   :  { %v2066_v5 = vpop.eup %2065 }
 0x22f   :  { %v781_v62 = vmul.f32 %v2066_v5, %v2062_v63  ;;  %v3582_v63 = vld [vmem:[#allocation39_spill] sm:$0xff] }
 0x230   :  { %v2068_v59 = vpop.eup %2067 }
 0x231   :  { %v780_v11 = vmul.f32 %v2068_v59, %v2784_v9 }
 0x232   :  { %v2070_v10 = vpop.eup %2069 }
 0x233   :  { %v2858_v7 = vadd.f32 %v781_v62, %v780_v11 }
 0x235   :  { %2071 = vtanh.f32 %v2858_v7 }
 0x242   :  { %v2072_v18 = vpop.eup %2071 }
 0x243   :  { %v784_v8 = vmul.f32 %v2072_v18, %v2070_v10 }
 0x245   :  { %854 = vmatmul.mubr.f32.vlgmr.msra.gmra.mxu0 %v784_v8  ;;  %925 = vmatmul.mubr.f32.vlgmr.msra.gmra.mxu1 %v784_v8 }
 0x246   :  { %964 = vmatpush1.msra.mxu0 %v2382_v12  ;;  %1035 = vmatpush1.msra.mxu1 %v2384_v13  ;;  %v3559_v12 = vld [vmem:[#allocation17_spill] sm:$0xff]  ;;  %v3560_v13 = vld [vmem:[#allocation18_spill] sm:$0xff] }
 0x247   :  { %965 = vmatprep.subr.mxu0 %v2388_v14  ;;  %1036 = vmatprep.subr.mxu1 %v2390_v15  ;;  %v3561_v14 = vld [vmem:[#allocation19_spill] sm:$0xff]  ;;  %v3562_v15 = vld [vmem:[#allocation20_spill] sm:$0xff] }
 0x248   :  { %966 = vmatpush1.msra.mxu0 %v2396_v16  ;;  %1037 = vmatpush1.msra.mxu1 %v2398_v17  ;;  %v3563_v16 = vld [vmem:[#allocation21_spill] sm:$0xff]  ;;  %v3564_v17 = vld [vmem:[#allocation22_spill] sm:$0xff] }
 0x249   :  { %967 = vmatprep.subr.mxu0 %v2407_v19  ;;  %1038 = vmatprep.subr.mxu1 %v2409_v20  ;;  %v3565_v19 = vld [vmem:[#allocation23_spill] sm:$0xff]  ;;  %v3566_v20 = vld [vmem:[#allocation24_spill] sm:$0xff] }
 0x24a   :  { %968 = vmatpush1.msra.mxu0 %v2413_v21  ;;  %1039 = vmatpush1.msra.mxu1 %v2415_v22  ;;  %v3567_v21 = vld [vmem:[#allocation25_spill] sm:$0xff]  ;;  %v3568_v22 = vld [vmem:[#allocation26_spill] sm:$0xff] }
 0x24b   :  { %969 = vmatprep.subr.mxu0 %v2419_v23  ;;  %1040 = vmatprep.subr.mxu1 %v2421_v24  ;;  %v3569_v23 = vld [vmem:[#allocation27_spill] sm:$0xff]  ;;  %v3570_v24 = vld [vmem:[#allocation28_spill] sm:$0xff] }
 0x24c   :  { %970 = vmatpush1.msra.mxu0 %v2427_v25  ;;  %1041 = vmatpush1.msra.mxu1 %v2429_v26  ;;  %v3571_v25 = vld [vmem:[#allocation29_spill] sm:$0xff]  ;;  %v3572_v26 = vld [vmem:[#allocation30_spill] sm:$0xff] }
 0x24d   :  { %971 = vmatprep.subr.mxu0 %v2438_v28  ;;  %1042 = vmatprep.subr.mxu1 %v2440_v29  ;;  %v3573_v28 = vld [vmem:[#allocation31_spill] sm:$0xff]  ;;  %v3574_v29 = vld [vmem:[#allocation32_spill] sm:$0xff] }
 0x24e   :  { %972 = vmatpush1.msra.mxu0 %v2444_v30  ;;  %1043 = vmatpush1.msra.mxu1 %v2446_v31  ;;  %v3575_v30 = vmov 0.0   ;;  %v3576_v31 = vld [vmem:[#allocation33_spill] sm:$0xff] }
 0x24f   :  { %973 = vmatprep.subr.mxu0 %v2450_v32  ;;  %1044 = vmatprep.subr.mxu1 %v2452_v33  ;;  %v2925_v32 = vld [vmem:[#allocation3 + $0x1e8] sm:$0xff]  ;;  %v2928_v33 = vld [vmem:[#allocation3 + $0x1f8] sm:$0xff] }
 0x250   :  { %974 = vmatpush1.msra.mxu0 %v2458_v34  ;;  %1045 = vmatpush1.msra.mxu1 %v2460_v35  ;;  %3577 = vst [vmem:[#allocation14_spill] sm:$0xff] %v2925_v32  ;;  %3578 = vst [vmem:[#allocation15_spill] sm:$0xff] %v2928_v33  ;;  %v3579_v35 = vld [vmem:[#allocation38_spill] sm:$0xff] }
 0x251   :  { %975 = vmatprep.subr.mxu0 %v2469_v37  ;;  %1046 = vmatprep.subr.mxu1 %v2471_v38 }
 0x252   :  { %976 = vmatpush1.msra.mxu0 %v2475_v39  ;;  %1047 = vmatpush1.msra.mxu1 %v2477_v40 }
 0x253   :  { %977 = vmatprep.subr.mxu0 %v2481_v41  ;;  %1048 = vmatprep.subr.mxu1 %v2483_v42 }
 0x254   :  { %978 = vmatpush1.msra.mxu0 %v2489_v43  ;;  %1049 = vmatpush1.msra.mxu1 %v2491_v44 }
 0x255   :  { %979 = vmatprep.subr.mxu0 %v2500_v46  ;;  %1050 = vmatprep.subr.mxu1 %v2502_v47 }
 0x256   :  { %980 = vmatpush1.msra.mxu0 %v2506_v48  ;;  %1051 = vmatpush1.msra.mxu1 %v2508_v49 }
 0x257   :  { %981 = vmatprep.subr.mxu0 %v2512_v50  ;;  %1052 = vmatprep.subr.mxu1 %v2514_v51 }
 0x258   :  { %982 = vmatpush1.msra.mxu0 %v2520_v52  ;;  %1053 = vmatpush1.msra.mxu1 %v2522_v53 }
 0x259   :  { %983 = vmatprep.subr.mxu0 %v2531_v55  ;;  %1054 = vmatprep.subr.mxu1 %v2533_v56 }
 0x25a   :  { %984 = vmatpush1.msra.mxu0 %v2537_v57  ;;  %1055 = vmatpush1.msra.mxu1 %v2539_v58 }
 0x25b   :  { %985 = vmatprep.subr.mxu0 %v3532_v27  ;;  %1056 = vmatprep.subr.mxu1 %v3533_v6 }
 0x25c   :  { %986 = vmatpush1.msra.mxu0 %v3534_v36  ;;  %1057 = vmatpush1.msra.mxu1 %v3559_v12 }
 0x25d   :  { %987 = vmatprep.subr.mxu0 %v3560_v13  ;;  %1058 = vmatprep.subr.mxu1 %v3561_v14 }
 0x25e   :  { %988 = vmatpush1.msra.mxu0 %v3562_v15  ;;  %1059 = vmatpush1.msra.mxu1 %v3563_v16 }
 0x25f   :  { %989 = vmatprep.subr.mxu0 %v3564_v17  ;;  %1060 = vmatprep.subr.mxu1 %v3565_v19 }
 0x260   :  { %990 = vmatpush1.msra.mxu0 %v3566_v20  ;;  %1061 = vmatpush1.msra.mxu1 %v3567_v21 }
 0x261   :  { %991 = vmatprep.subr.mxu0 %v3568_v22  ;;  %1062 = vmatprep.subr.mxu1 %v3569_v23 }
 0x262   :  { %992 = vmatpush1.msra.mxu0 %v3570_v24  ;;  %1063 = vmatpush1.msra.mxu1 %v3571_v25 }
 0x263   :  { %993 = vmatprep.subr.mxu0 %v3572_v26  ;;  %1064 = vmatprep.subr.mxu1 %v3573_v28 }
 0x264   :  { %994 = vmatpush1.msra.mxu0 %v3574_v29  ;;  %1027 = vmatprep.mubr.f32.mxu0 %v3575_v30 }
 0x265   :  { %1065 = vmatpush1.msra.mxu1 %v3576_v31  ;;  %1098 = vmatprep.mubr.f32.mxu1 %v3575_v30 }
 0x266   :  { %1137 = vmatprep.subr.mxu0 %v2925_v32  ;;  %1208 = vmatprep.subr.mxu1 %v2928_v33 }
 0x305   :  { %v855_v34 = vpop.f32.mrf.mxu0  ;;  %v926_v61 = vpop.f32.mrf.mxu1 }
 0x306   :  { %v931_v37 = vadd.f32 %v855_v34, %v3579_v35  ;;  %v933_v1 = vadd.f32 %v926_v61, %v3582_v63  ;;  %v2954_v63 = vld [vmem:[#allocation3 + $0x1d0] sm:$0xff] }
 0x307   :  { %v857_v38 = vpop.f32.mrf.mxu0  ;;  %v928_v3 = vpop.f32.mrf.mxu1 }
 0x308   :  { %v1961_v9 = vmul.f32 -1.442695, %v931_v37  ;;  %v932_v0 = vadd.f32 %v857_v38, %v3580_v54  ;;  %v934_v60 = vadd.f32 %v928_v3, %v3581_v2  ;;  %v2942_v3 = vld [vmem:[#allocation3 + $0x1f0] sm:$0xff]  ;;  %v2945_v2 = vld [vmem:[#allocation3 + $0x1c8] sm:$0xff] }
 0x30a   :  { %2073 = vpow2.f32 %v1961_v9  ;;  %v1962_v45 = vmul.f32 -1.442695, %v932_v0  ;;  %v1963_v5 = vmul.f32 -1.442695, %v934_v60  ;;  %v2951_v60 = vld [vmem:[#allocation3 + $0x1c0] sm:$0xff] }
 0x30c   :  { %2075 = vpow2.f32 %v1962_v45  ;;  %v2939_v45 = vld [vmem:[#allocation3 + $0x1e0] sm:$0xff] }
 0x30d   :  { %2077 = vtanh.f32 %v933_v1  ;;  %v2957_v1 = vld [vmem:[#allocation3 + $0x1a8] sm:$0xff] }
 0x30e   :  { %2079 = vpow2.f32 %v1963_v5  ;;  %v2960_v5 = vld [vmem:[#allocation3 + $0x1b8] sm:$0xff] }
 0x317   :  { %v2074_v62 = vpop.eup %2073 }
 0x318   :  { %v938_v59 = vadd.f32 1.0, %v2074_v62  ;;  %v2963_v62 = vld [vmem:[#allocation3 + $0x1a0] sm:$0xff] }
 0x319   :  { %v2076_v4 = vpop.eup %2075 }
 0x31a   :  { %2081 = vrcp.f32 %v938_v59  ;;  %v944_v11 = vadd.f32 1.0, %v2076_v4  ;;  %v2078_v10 = vpop.eup %2077  ;;  %v2966_v59 = vld [vmem:[#allocation3 + $0x1b0] sm:$0xff]  ;;  %v2969_v4 = vld [vmem:[#allocation3 + $0x188] sm:$0xff] }
 0x31b   :  { %v2080_v18 = vpop.eup %2079 }
 0x31c   :  { %2083 = vrcp.f32 %v944_v11  ;;  %v951_v37 = vadd.f32 1.0, %v2080_v18  ;;  %v2972_v11 = vld [vmem:[#allocation3 + $0x198] sm:$0xff]  ;;  %v2978_v18 = vld [vmem:[#allocation3 + $0x190] sm:$0xff] }
 0x31e   :  { %2085 = vrcp.f32 %v951_v37  ;;  %v2990_v37 = vld [vmem:[#allocation3 + $0x170] sm:$0xff] }
 0x31f   :  { %3584 = vst [vmem:[#allocation12_spill] sm:$0xff] %v2990_v37 }
 0x327   :  { %v2082_v8 = vpop.eup %2081 }
 0x328   :  { %v955_v34 = vmul.f32 %v2082_v8, %v2078_v10  ;;  %v2975_v10 = vld [vmem:[#allocation3 + $0x180] sm:$0xff]  ;;  %v2981_v8 = vld [vmem:[#allocation3 + $0x168] sm:$0xff] }
 0x329   :  { %v2084_v35 = vpop.eup %2083 }
 0x32a   :  { %v954_v38 = vmul.f32 %v2084_v35, %v2858_v7  ;;  %v2948_v7 = vld [vmem:[#allocation3 + $0x1d8] sm:$0xff]  ;;  %v2987_v35 = vld [vmem:[#allocation3 + $0x160] sm:$0xff] }
 0x32b   :  { %v2086_v54 = vpop.eup %2085  ;;  %3583 = vst [vmem:[#allocation16_spill] sm:$0xff] %v2987_v35 }
 0x32c   :  { %v2936_v9 = vadd.f32 %v955_v34, %v954_v38  ;;  %v2984_v34 = vld [vmem:[#allocation3 + $0x178] sm:$0xff]  ;;  %v2993_v38 = vld [vmem:[#allocation3 + $0x148] sm:$0xff] }
 0x32e   :  { %2087 = vtanh.f32 %v2936_v9 }
 0x33b   :  { %v2088_v0 = vpop.eup %2087 }
 0x33c   :  { %v958_v61 = vmul.f32 %v2088_v0, %v2086_v54  ;;  %v2996_v54 = vld [vmem:[#allocation3 + $0x158] sm:$0xff]  ;;  %v2999_v0 = vld [vmem:[#allocation3 + $0x140] sm:$0xff] }
 0x33e   :  { %1028 = vmatmul.mubr.f32.vlgmr.msra.gmra.mxu0 %v958_v61  ;;  %1099 = vmatmul.mubr.f32.vlgmr.msra.gmra.mxu1 %v958_v61  ;;  %v3002_v61 = vld [vmem:[#allocation3 + $0x150] sm:$0xff] }
 0x33f   :  { %1138 = vmatpush1.msra.mxu0 %v2939_v45  ;;  %1209 = vmatpush1.msra.mxu1 %v2942_v3 }
 0x340   :  { %1139 = vmatprep.subr.mxu0 %v2945_v2  ;;  %1210 = vmatprep.subr.mxu1 %v2948_v7 }
 0x341   :  { %1140 = vmatpush1.msra.mxu0 %v2951_v60  ;;  %1211 = vmatpush1.msra.mxu1 %v2954_v63 }
 0x342   :  { %1141 = vmatprep.subr.mxu0 %v2957_v1  ;;  %1212 = vmatprep.subr.mxu1 %v2960_v5 }
 0x343   :  { %1142 = vmatpush1.msra.mxu0 %v2963_v62  ;;  %1213 = vmatpush1.msra.mxu1 %v2966_v59 }
 0x344   :  { %1143 = vmatprep.subr.mxu0 %v2969_v4  ;;  %1214 = vmatprep.subr.mxu1 %v2972_v11 }
 0x345   :  { %1144 = vmatpush1.msra.mxu0 %v2975_v10  ;;  %1215 = vmatpush1.msra.mxu1 %v2978_v18 }
 0x346   :  { %1145 = vmatprep.subr.mxu0 %v2981_v8  ;;  %1216 = vmatprep.subr.mxu1 %v2984_v34 }
 0x347   :  { %1146 = vmatpush1.msra.mxu0 %v2987_v35  ;;  %1217 = vmatpush1.msra.mxu1 %v2990_v37  ;;  %v3005_v35 = vld [vmem:[#allocation3 + $0x128] sm:$0xff]  ;;  %v3008_v37 = vld [vmem:[#allocation3 + $0x138] sm:$0xff] }
 0x348   :  { %1147 = vmatprep.subr.mxu0 %v2993_v38  ;;  %1218 = vmatprep.subr.mxu1 %v2996_v54 }
 0x349   :  { %1148 = vmatpush1.msra.mxu0 %v2999_v0  ;;  %1219 = vmatpush1.msra.mxu1 %v3002_v61 }
 0x34a   :  { %1149 = vmatprep.subr.mxu0 %v3005_v35  ;;  %1220 = vmatprep.subr.mxu1 %v3008_v37 }
 0x34b   :  { %1150 = vmatpush1.msra.mxu0 %v2475_v39  ;;  %1221 = vmatpush1.msra.mxu1 %v2477_v40  ;;  %v3585_v40 = vld [vmem:[#allocation42_spill] sm:$0xff] }
 0x34c   :  { %1151 = vmatprep.subr.mxu0 %v2481_v41  ;;  %1222 = vmatprep.subr.mxu1 %v2483_v42 }
 0x34d   :  { %1152 = vmatpush1.msra.mxu0 %v2489_v43  ;;  %1223 = vmatpush1.msra.mxu1 %v2491_v44  ;;  %v3586_v44 = vld [vmem:[#allocation44_spill] sm:$0xff] }
 0x34e   :  { %1153 = vmatprep.subr.mxu0 %v2500_v46  ;;  %1224 = vmatprep.subr.mxu1 %v2502_v47 }
 0x34f   :  { %1154 = vmatpush1.msra.mxu0 %v2506_v48  ;;  %1225 = vmatpush1.msra.mxu1 %v2508_v49 }
 0x350   :  { %1155 = vmatprep.subr.mxu0 %v2512_v50  ;;  %1226 = vmatprep.subr.mxu1 %v2514_v51  ;;  %v3587_v50 = vld [vmem:[#allocation45_spill] sm:$0xff] }
 0x351   :  { %1156 = vmatpush1.msra.mxu0 %v2520_v52  ;;  %1227 = vmatpush1.msra.mxu1 %v2522_v53  ;;  %v3588_v52 = vld [vmem:[#allocation43_spill] sm:$0xff] }
 0x352   :  { %1157 = vmatprep.subr.mxu0 %v2531_v55  ;;  %1228 = vmatprep.subr.mxu1 %v2533_v56 }
 0x353   :  { %1158 = vmatpush1.msra.mxu0 %v2537_v57  ;;  %1229 = vmatpush1.msra.mxu1 %v2539_v58 }
 0x354   :  { %1159 = vmatprep.subr.mxu0 %v3532_v27  ;;  %1230 = vmatprep.subr.mxu1 %v3533_v6 }
 0x355   :  { %1160 = vmatpush1.msra.mxu0 %v3534_v36  ;;  %1231 = vmatpush1.msra.mxu1 %v3559_v12 }
 0x356   :  { %1161 = vmatprep.subr.mxu0 %v3560_v13  ;;  %1232 = vmatprep.subr.mxu1 %v3561_v14 }
 0x357   :  { %1162 = vmatpush1.msra.mxu0 %v3562_v15  ;;  %1233 = vmatpush1.msra.mxu1 %v3563_v16 }
 0x358   :  { %1163 = vmatprep.subr.mxu0 %v3564_v17  ;;  %1234 = vmatprep.subr.mxu1 %v3565_v19 }
 0x359   :  { %1164 = vmatpush1.msra.mxu0 %v3566_v20  ;;  %1235 = vmatpush1.msra.mxu1 %v3567_v21 }
 0x35a   :  { %1165 = vmatprep.subr.mxu0 %v3568_v22  ;;  %1236 = vmatprep.subr.mxu1 %v3569_v23  ;;  %v3589_v22 = vld [vmem:[#allocation16_spill] sm:$0xff] }
 0x35b   :  { %1166 = vmatpush1.msra.mxu0 %v3570_v24  ;;  %1237 = vmatpush1.msra.mxu1 %v3571_v25  ;;  %v3590_v23 = vld [vmem:[#allocation12_spill] sm:$0xff]  ;;  %v3085_v24 = vld [vmem:[#allocation3 + $0x120] sm:$0xff]  ;;  %v3088_v25 = vld [vmem:[#allocation3 + $0x130] sm:$0xff] }
 0x35c   :  { %1167 = vmatprep.subr.mxu0 %v3572_v26  ;;  %1238 = vmatprep.subr.mxu1 %v3573_v28  ;;  %v3091_v26 = vld [vmem:[#allocation3 + $0x108] sm:$0xff]  ;;  %v3094_v28 = vld [vmem:[#allocation3 + $0x118] sm:$0xff] }
 0x35d   :  { %1168 = vmatpush1.msra.mxu0 %v3574_v29  ;;  %1201 = vmatprep.mubr.f32.mxu0 %v3575_v30  ;;  %v3097_v29 = vld [vmem:[#allocation3 + $0x100] sm:$0xff] }
 0x35e   :  { %1239 = vmatpush1.msra.mxu1 %v3576_v31  ;;  %1272 = vmatprep.mubr.f32.mxu1 %v3575_v30  ;;  %v3100_v31 = vld [vmem:[#allocation3 + $0x110] sm:$0xff] }
 0x35f   :  { %1311 = vmatprep.subr.mxu0 %v2925_v32  ;;  %1382 = vmatprep.subr.mxu1 %v2928_v33 }
 0x3fe   :  { %v1029_v39 = vpop.f32.mrf.mxu0  ;;  %v1100_v47 = vpop.f32.mrf.mxu1 }
 0x3ff   :  { %v1105_v41 = vadd.f32 %v1029_v39, %v3585_v40  ;;  %v1107_v53 = vadd.f32 %v1100_v47, %v3588_v52  ;;  %v3106_v39 = vld [vmem:[#allocation3 + $0xf8] sm:$0xff]  ;;  %v3109_v40 = vld [vmem:[#allocation3 + $0xe0] sm:$0xff]  ;;  %v3127_v47 = vld [vmem:[#allocation3 + $0xa8] sm:$0xff] }
 0x400   :  { %v1031_v42 = vpop.f32.mrf.mxu0  ;;  %v1102_v49 = vpop.f32.mrf.mxu1  ;;  %v3142_v52 = vld [vmem:[#allocation3 + $0x98] sm:$0xff] }
 0x401   :  { %v1964_v43 = vmul.f32 -1.442695, %v1105_v41  ;;  %v1106_v46 = vadd.f32 %v1031_v42, %v3586_v44  ;;  %v1108_v51 = vadd.f32 %v1102_v49, %v3587_v50  ;;  %v3112_v41 = vld [vmem:[#allocation3 + $0xf0] sm:$0xff]  ;;  %v3115_v42 = vld [vmem:[#allocation3 + $0xc8] sm:$0xff]  ;;  %v3121_v44 = vld [vmem:[#allocation3 + $0xc0] sm:$0xff] }
 0x402   :  { %v3133_v49 = vld [vmem:[#allocation3 + $0xa0] sm:$0xff]  ;;  %v3136_v50 = vld [vmem:[#allocation3 + $0xb0] sm:$0xff] }
 0x403   :  { %2089 = vpow2.f32 %v1964_v43  ;;  %v1965_v48 = vmul.f32 -1.442695, %v1106_v46  ;;  %v1966_v55 = vmul.f32 -1.442695, %v1108_v51  ;;  %v3118_v43 = vld [vmem:[#allocation3 + $0xd8] sm:$0xff]  ;;  %v3124_v46 = vld [vmem:[#allocation3 + $0xd0] sm:$0xff] }
 0x404   :  { %v3139_v51 = vld [vmem:[#allocation3 + $0x88] sm:$0xff] }
 0x405   :  { %2091 = vpow2.f32 %v1965_v48  ;;  %v3130_v48 = vld [vmem:[#allocation3 + $0xb8] sm:$0xff] }
 0x406   :  { %2093 = vtanh.f32 %v1107_v53  ;;  %v3145_v53 = vld [vmem:[#allocation3 + $0x80] sm:$0xff] }
 0x407   :  { %2095 = vpow2.f32 %v1966_v55  ;;  %v3148_v55 = vld [vmem:[#allocation3 + $0x90] sm:$0xff] }
 0x408   :  { %3591 = vst [vmem:[#allocation13_spill] sm:$0xff] %v3148_v55 }
 0x410   :  { %v2090_v56 = vpop.eup %2089 }
 0x411   :  { %v1112_v57 = vadd.f32 1.0, %v2090_v56  ;;  %v3151_v56 = vld [vmem:[#allocation3 + $0x68] sm:$0xff] }
 0x412   :  { %v2092_v58 = vpop.eup %2091  ;;  %3592 = vst [vmem:[#allocation34_spill] sm:$0xff] %v3151_v56 }
 0x413   :  { %2097 = vrcp.f32 %v1112_v57  ;;  %v1118_v27 = vadd.f32 1.0, %v2092_v58  ;;  %v2094_v6 = vpop.eup %2093  ;;  %v3154_v57 = vld [vmem:[#allocation3 + $0x78] sm:$0xff]  ;;  %v3157_v58 = vld [vmem:[#allocation3 + $0x60] sm:$0xff] }
 0x414   :  { %v2096_v36 = vpop.eup %2095  ;;  %3593 = vst [vmem:[#allocation36_spill] sm:$0xff] %v3154_v57  ;;  %3594 = vst [vmem:[#allocation37_spill] sm:$0xff] %v3157_v58 }
 0x415   :  { %2099 = vrcp.f32 %v1118_v27  ;;  %v1125_v15 = vadd.f32 1.0, %v2096_v36  ;;  %v3160_v27 = vld [vmem:[#allocation3 + $0x70] sm:$0xff]  ;;  %v3166_v36 = vld [vmem:[#allocation3 + $0x58] sm:$0xff] }
 0x416   :  { %3595 = vst [vmem:[#allocation35_spill] sm:$0xff] %v3160_v27  ;;  %3597 = vst [vmem:[#allocation18_spill] sm:$0xff] %v3166_v36 }
 0x417   :  { %2101 = vrcp.f32 %v1125_v15  ;;  %v3178_v15 = vld [vmem:[#allocation3 + $0x38] sm:$0xff] }
 0x418   :  { %3601 = vst [vmem:[#allocation22_spill] sm:$0xff] %v3178_v15 }
 0x420   :  { %v2098_v12 = vpop.eup %2097 }
 0x421   :  { %v1129_v13 = vmul.f32 %v2098_v12, %v2094_v6  ;;  %v3163_v6 = vld [vmem:[#allocation3 + $0x48] sm:$0xff]  ;;  %v3169_v12 = vld [vmem:[#allocation3 + $0x40] sm:$0xff] }
 0x422   :  { %v2100_v14 = vpop.eup %2099  ;;  %3596 = vst [vmem:[#allocation17_spill] sm:$0xff] %v3163_v6  ;;  %3598 = vst [vmem:[#allocation19_spill] sm:$0xff] %v3169_v12 }
 0x423   :  { %v1128_v16 = vmul.f32 %v2100_v14, %v2936_v9  ;;  %v3103_v9 = vld [vmem:[#allocation3 + $0xe8] sm:$0xff] }
 0x424   :  { %v2102_v19 = vpop.eup %2101  ;;  %v3175_v14 = vld [vmem:[#allocation3 + $0x28] sm:$0xff] }
 0x425   :  { %v3058_v17 = vadd.f32 %v1129_v13, %v1128_v16  ;;  %v3172_v13 = vld [vmem:[#allocation3 + $0x50] sm:$0xff]  ;;  %3600 = vst [vmem:[#allocation21_spill] sm:$0xff] %v3175_v14  ;;  %v3181_v16 = vld [vmem:[#allocation3 + $0x20] sm:$0xff] }
 0x426   :  { %3599 = vst [vmem:[#allocation20_spill] sm:$0xff] %v3172_v13  ;;  %3602 = vst [vmem:[#allocation23_spill] sm:$0xff] %v3181_v16 }
 0x427   :  { %2103 = vtanh.f32 %v3058_v17 }
 0x434   :  { %v2104_v20 = vpop.eup %2103 }
 0x435   :  { %v1132_v21 = vmul.f32 %v2104_v20, %v2102_v19  ;;  %v3184_v19 = vld [vmem:[#allocation3 + $0x30] sm:$0xff]  ;;  %v3187_v20 = vld [vmem:[#allocation3 + $0x8] sm:$0xff] }
 0x436   :  { %3603 = vst [vmem:[#allocation24_spill] sm:$0xff] %v3184_v19  ;;  %3604 = vst [vmem:[#allocation25_spill] sm:$0xff] %v3187_v20 }
 0x437   :  { %1202 = vmatmul.mubr.f32.vlgmr.msra.gmra.mxu0 %v1132_v21  ;;  %1273 = vmatmul.mubr.f32.vlgmr.msra.gmra.mxu1 %v1132_v21  ;;  %v3190_v21 = vld [vmem:[#allocation3 + $0x18] sm:$0xff] }
 0x438   :  { %1312 = vmatpush1.msra.mxu0 %v2939_v45  ;;  %1383 = vmatpush1.msra.mxu1 %v2942_v3  ;;  %3605 = vst [vmem:[#allocation26_spill] sm:$0xff] %v3190_v21 }
 0x439   :  { %1313 = vmatprep.subr.mxu0 %v2945_v2  ;;  %1384 = vmatprep.subr.mxu1 %v2948_v7 }
 0x43a   :  { %1314 = vmatpush1.msra.mxu0 %v2951_v60  ;;  %1385 = vmatpush1.msra.mxu1 %v2954_v63 }
 0x43b   :  { %1315 = vmatprep.subr.mxu0 %v2957_v1  ;;  %1386 = vmatprep.subr.mxu1 %v2960_v5 }
 0x43c   :  { %1316 = vmatpush1.msra.mxu0 %v2963_v62  ;;  %1387 = vmatpush1.msra.mxu1 %v2966_v59 }
 0x43d   :  { %1317 = vmatprep.subr.mxu0 %v2969_v4  ;;  %1388 = vmatprep.subr.mxu1 %v2972_v11 }
 0x43e   :  { %1318 = vmatpush1.msra.mxu0 %v2975_v10  ;;  %1389 = vmatpush1.msra.mxu1 %v2978_v18 }
 0x43f   :  { %1319 = vmatprep.subr.mxu0 %v2981_v8  ;;  %1390 = vmatprep.subr.mxu1 %v2984_v34 }
 0x440   :  { %1320 = vmatpush1.msra.mxu0 %v3589_v22  ;;  %1391 = vmatpush1.msra.mxu1 %v3590_v23 }
 0x441   :  { %1321 = vmatprep.subr.mxu0 %v2993_v38  ;;  %1392 = vmatprep.subr.mxu1 %v2996_v54 }
 0x442   :  { %1322 = vmatpush1.msra.mxu0 %v2999_v0  ;;  %1393 = vmatpush1.msra.mxu1 %v3002_v61 }
 0x443   :  { %1323 = vmatprep.subr.mxu0 %v3005_v35  ;;  %1394 = vmatprep.subr.mxu1 %v3008_v37 }
 0x444   :  { %1324 = vmatpush1.msra.mxu0 %v3085_v24  ;;  %1395 = vmatpush1.msra.mxu1 %v3088_v25 }
 0x445   :  { %1325 = vmatprep.subr.mxu0 %v3091_v26  ;;  %1396 = vmatprep.subr.mxu1 %v3094_v28 }
 0x446   :  { %1326 = vmatpush1.msra.mxu0 %v3097_v29  ;;  %1397 = vmatpush1.msra.mxu1 %v3100_v31 }
 0x447   :  { %1327 = vmatprep.subr.mxu0 %v3103_v9  ;;  %1398 = vmatprep.subr.mxu1 %v3106_v39 }
 0x448   :  { %1328 = vmatpush1.msra.mxu0 %v3109_v40  ;;  %1399 = vmatpush1.msra.mxu1 %v3112_v41 }
 0x449   :  { %1329 = vmatprep.subr.mxu0 %v3115_v42  ;;  %1400 = vmatprep.subr.mxu1 %v3118_v43 }
 0x44a   :  { %1330 = vmatpush1.msra.mxu0 %v3121_v44  ;;  %1401 = vmatpush1.msra.mxu1 %v3124_v46 }
 0x44b   :  { %1331 = vmatprep.subr.mxu0 %v3127_v47  ;;  %1402 = vmatprep.subr.mxu1 %v3130_v48 }
 0x44c   :  { %1332 = vmatpush1.msra.mxu0 %v3133_v49  ;;  %1403 = vmatpush1.msra.mxu1 %v3136_v50 }
 0x44d   :  { %1333 = vmatprep.subr.mxu0 %v3139_v51  ;;  %1404 = vmatprep.subr.mxu1 %v3142_v52 }
 0x44e   :  { %1334 = vmatpush1.msra.mxu0 %v3145_v53  ;;  %1405 = vmatpush1.msra.mxu1 %v3148_v55 }
 0x44f   :  { %1335 = vmatprep.subr.mxu0 %v3151_v56  ;;  %1406 = vmatprep.subr.mxu1 %v3154_v57  ;;  %v3611_v57 = vld [vmem:[#allocation47_spill] sm:$0xff] }
 0x450   :  { %1336 = vmatpush1.msra.mxu0 %v3157_v58  ;;  %1407 = vmatpush1.msra.mxu1 %v3160_v27  ;;  %v3610_v58 = vld [vmem:[#allocation49_spill] sm:$0xff] }
 0x451   :  { %1337 = vmatprep.subr.mxu0 %v3163_v6  ;;  %1408 = vmatprep.subr.mxu1 %v3166_v36 }
 0x452   :  { %1338 = vmatpush1.msra.mxu0 %v3169_v12  ;;  %1409 = vmatpush1.msra.mxu1 %v3172_v13  ;;  %v3609_v12 = vld [vmem:[#allocation48_spill] sm:$0xff] }
 0x453   :  { %1339 = vmatprep.subr.mxu0 %v3175_v14  ;;  %1410 = vmatprep.subr.mxu1 %v3178_v15  ;;  %v3193_v14 = vld [vmem:[#allocation3] sm:$0xff]  ;;  %v3197_v15 = vld [vmem:[#allocation3 + $0x10] sm:$0xff] }
 0x454   :  { %1340 = vmatpush1.msra.mxu0 %v3181_v16  ;;  %1411 = vmatpush1.msra.mxu1 %v3184_v19  ;;  %3606 = vst [vmem:[#allocation27_spill] sm:$0xff] %v3193_v14  ;;  %3607 = vst [vmem:[#allocation28_spill] sm:$0xff] %v3197_v15  ;;  %v3608_v19 = vld [vmem:[#allocation46_spill] sm:$0xff] }
 0x455   :  { %1341 = vmatprep.subr.mxu0 %v3187_v20  ;;  %1412 = vmatprep.subr.mxu1 %v3190_v21 }
 0x456   :  { %1342 = vmatpush1.msra.mxu0 %v3193_v14  ;;  %1375 = vmatprep.mubr.f32.mxu0 %v3575_v30 }
 0x457   :  { %1413 = vmatpush1.msra.mxu1 %v3197_v15  ;;  %1446 = vmatprep.mubr.f32.mxu1 %v3575_v30 }
 0x458   :  { %1485 = vmatprep.subr.mxu0 %v2925_v32  ;;  %1556 = vmatprep.subr.mxu1 %v2928_v33 }
 0x4f7   :  { %v1203_v20 = vpop.f32.mrf.mxu0  ;;  %v1274_v14 = vpop.f32.mrf.mxu1 }
 0x4f8   :  { %v1279_v16 = vadd.f32 %v1203_v20, %v3608_v19  ;;  %v1281_v30 = vadd.f32 %v1274_v14, %v3611_v57  ;;  %v3617_v14 = vld [vmem:[#allocation17_spill] sm:$0xff] }
 0x4f9   :  { %v1205_v21 = vpop.f32.mrf.mxu0  ;;  %v1276_v27 = vpop.f32.mrf.mxu1 }
 0x4fa   :  { %v1967_v13 = vmul.f32 -1.442695, %v1279_v16  ;;  %v1280_v36 = vadd.f32 %v1205_v21, %v3609_v12  ;;  %v1282_v15 = vadd.f32 %v1276_v27, %v3610_v58  ;;  %v3616_v27 = vld [vmem:[#allocation35_spill] sm:$0xff] }
 0x4fc   :  { %2105 = vpow2.f32 %v1967_v13  ;;  %v1968_v6 = vmul.f32 -1.442695, %v1280_v36  ;;  %v1969_v56 = vmul.f32 -1.442695, %v1282_v15  ;;  %v3618_v15 = vld [vmem:[#allocation18_spill] sm:$0xff] }
 0x4fe   :  { %2107 = vpow2.f32 %v1968_v6 }
 0x4ff   :  { %2109 = vtanh.f32 %v1281_v30 }
 0x500   :  { %2111 = vpow2.f32 %v1969_v56  ;;  %v3615_v56 = vld [vmem:[#allocation37_spill] sm:$0xff] }
 0x509   :  { %v2106_v32 = vpop.eup %2105 }
 0x50a   :  { %v1286_v55 = vadd.f32 1.0, %v2106_v32 }
 0x50b   :  { %v2108_v33 = vpop.eup %2107 }
 0x50c   :  { %2113 = vrcp.f32 %v1286_v55  ;;  %v1292_v19 = vadd.f32 1.0, %v2108_v33  ;;  %v2110_v16 = vpop.eup %2109  ;;  %v3612_v33 = vld [vmem:[#allocation13_spill] sm:$0xff]  ;;  %v3614_v55 = vld [vmem:[#allocation36_spill] sm:$0xff] }
 0x50d   :  { %v2112_v12 = vpop.eup %2111 }
 0x50e   :  { %2115 = vrcp.f32 %v1292_v19  ;;  %v1299_v6 = vadd.f32 1.0, %v2112_v12  ;;  %v3619_v19 = vld [vmem:[#allocation19_spill] sm:$0xff]  ;;  %v3621_v12 = vld [vmem:[#allocation21_spill] sm:$0xff] }
 0x510   :  { %2117 = vrcp.f32 %v1299_v6  ;;  %v3625_v6 = vld [vmem:[#allocation25_spill] sm:$0xff] }
 0x519   :  { %v2114_v13 = vpop.eup %2113 }
 0x51a   :  { %v1303_v20 = vmul.f32 %v2114_v13, %v2110_v16  ;;  %v3620_v16 = vld [vmem:[#allocation20_spill] sm:$0xff]  ;;  %v3622_v13 = vld [vmem:[#allocation22_spill] sm:$0xff] }
 0x51b   :  { %v2116_v36 = vpop.eup %2115 }
 0x51c   :  { %v1302_v21 = vmul.f32 %v2116_v36, %v3058_v17  ;;  %v3613_v17 = vld [vmem:[#allocation34_spill] sm:$0xff]  ;;  %v3624_v36 = vld [vmem:[#allocation24_spill] sm:$0xff] }
 0x51d   :  { %v2118_v32 = vpop.eup %2117 }
 0x51e   :  { %v3208_v58 = vadd.f32 %v1303_v20, %v1302_v21  ;;  %v3623_v20 = vld [vmem:[#allocation23_spill] sm:$0xff]  ;;  %v3626_v21 = vld [vmem:[#allocation26_spill] sm:$0xff] }
 0x520   :  { %2119 = vtanh.f32 %v3208_v58 }
 0x52d   :  { %v2120_v30 = vpop.eup %2119 }
 0x52e   :  { %v1306_v57 = vmul.f32 %v2120_v30, %v2118_v32  ;;  %v3627_v32 = vld [vmem:[#allocation27_spill] sm:$0xff]  ;;  %v3628_v30 = vmov 0.0  }
 0x530   :  { %1376 = vmatmul.mubr.f32.vlgmr.msra.gmra.mxu0 %v1306_v57  ;;  %1447 = vmatmul.mubr.f32.vlgmr.msra.gmra.mxu1 %v1306_v57  ;;  %v3629_v57 = vld [vmem:[#allocation28_spill] sm:$0xff] }
 0x531   :  { %1486 = vmatpush1.msra.mxu0 %v2939_v45  ;;  %1557 = vmatpush1.msra.mxu1 %v2942_v3 }
 0x532   :  { %1487 = vmatprep.subr.mxu0 %v2945_v2  ;;  %1558 = vmatprep.subr.mxu1 %v2948_v7 }
 0x533   :  { %1488 = vmatpush1.msra.mxu0 %v2951_v60  ;;  %1559 = vmatpush1.msra.mxu1 %v2954_v63 }
 0x534   :  { %1489 = vmatprep.subr.mxu0 %v2957_v1  ;;  %1560 = vmatprep.subr.mxu1 %v2960_v5 }
 0x535   :  { %1490 = vmatpush1.msra.mxu0 %v2963_v62  ;;  %1561 = vmatpush1.msra.mxu1 %v2966_v59 }
 0x536   :  { %1491 = vmatprep.subr.mxu0 %v2969_v4  ;;  %1562 = vmatprep.subr.mxu1 %v2972_v11 }
 0x537   :  { %1492 = vmatpush1.msra.mxu0 %v2975_v10  ;;  %1563 = vmatpush1.msra.mxu1 %v2978_v18 }
 0x538   :  { %1493 = vmatprep.subr.mxu0 %v2981_v8  ;;  %1564 = vmatprep.subr.mxu1 %v2984_v34 }
 0x539   :  { %1494 = vmatpush1.msra.mxu0 %v3589_v22  ;;  %1565 = vmatpush1.msra.mxu1 %v3590_v23 }
 0x53a   :  { %1495 = vmatprep.subr.mxu0 %v2993_v38  ;;  %1566 = vmatprep.subr.mxu1 %v2996_v54 }
 0x53b   :  { %1496 = vmatpush1.msra.mxu0 %v2999_v0  ;;  %1567 = vmatpush1.msra.mxu1 %v3002_v61 }
 0x53c   :  { %1497 = vmatprep.subr.mxu0 %v3005_v35  ;;  %1568 = vmatprep.subr.mxu1 %v3008_v37 }
 0x53d   :  { %1498 = vmatpush1.msra.mxu0 %v3085_v24  ;;  %1569 = vmatpush1.msra.mxu1 %v3088_v25 }
 0x53e   :  { %1499 = vmatprep.subr.mxu0 %v3091_v26  ;;  %1570 = vmatprep.subr.mxu1 %v3094_v28 }
 0x53f   :  { %1500 = vmatpush1.msra.mxu0 %v3097_v29  ;;  %1571 = vmatpush1.msra.mxu1 %v3100_v31 }
 0x540   :  { %1501 = vmatprep.subr.mxu0 %v3103_v9  ;;  %1572 = vmatprep.subr.mxu1 %v3106_v39 }
 0x541   :  { %1502 = vmatpush1.msra.mxu0 %v3109_v40  ;;  %1573 = vmatpush1.msra.mxu1 %v3112_v41 }
 0x542   :  { %1503 = vmatprep.subr.mxu0 %v3115_v42  ;;  %1574 = vmatprep.subr.mxu1 %v3118_v43 }
 0x543   :  { %1504 = vmatpush1.msra.mxu0 %v3121_v44  ;;  %1575 = vmatpush1.msra.mxu1 %v3124_v46 }
 0x544   :  { %1505 = vmatprep.subr.mxu0 %v3127_v47  ;;  %1576 = vmatprep.subr.mxu1 %v3130_v48 }
 0x545   :  { %1506 = vmatpush1.msra.mxu0 %v3133_v49  ;;  %1577 = vmatpush1.msra.mxu1 %v3136_v50 }
 0x546   :  { %1507 = vmatprep.subr.mxu0 %v3139_v51  ;;  %1578 = vmatprep.subr.mxu1 %v3142_v52 }
 0x547   :  { %1508 = vmatpush1.msra.mxu0 %v3145_v53  ;;  %1579 = vmatpush1.msra.mxu1 %v3612_v33 }
 0x548   :  { %1509 = vmatprep.subr.mxu0 %v3613_v17  ;;  %1580 = vmatprep.subr.mxu1 %v3614_v55  ;;  %v3635_v55 = vld [vmem:[#allocation51_spill] sm:$0xff] }
 0x549   :  { %1510 = vmatpush1.msra.mxu0 %v3615_v56  ;;  %1581 = vmatpush1.msra.mxu1 %v3616_v27  ;;  %v3634_v56 = vld [vmem:[#allocation53_spill] sm:$0xff] }
 0x54a   :  { %1511 = vmatprep.subr.mxu0 %v3617_v14  ;;  %1582 = vmatprep.subr.mxu1 %v3618_v15 }
 0x54b   :  { %1512 = vmatpush1.msra.mxu0 %v3619_v19  ;;  %1583 = vmatpush1.msra.mxu1 %v3620_v16  ;;  %v3630_v16 = vld [vmem:[#allocation14_spill] sm:$0xff] }
 0x54c   :  { %1513 = vmatprep.subr.mxu0 %v3621_v12  ;;  %1584 = vmatprep.subr.mxu1 %v3622_v13  ;;  %v3631_v12 = vld [vmem:[#allocation15_spill] sm:$0xff] }
 0x54d   :  { %1514 = vmatpush1.msra.mxu0 %v3623_v20  ;;  %1585 = vmatpush1.msra.mxu1 %v3624_v36  ;;  %v3632_v20 = vld [vmem:[#allocation50_spill] sm:$0xff] }
 0x54e   :  { %1515 = vmatprep.subr.mxu0 %v3625_v6  ;;  %1586 = vmatprep.subr.mxu1 %v3626_v21  ;;  %v3633_v6 = vld [vmem:[#allocation52_spill] sm:$0xff] }
 0x54f   :  { %1516 = vmatpush1.msra.mxu0 %v3627_v32  ;;  %1549 = vmatprep.mubr.f32.mxu0 %v3628_v30 }
 0x550   :  { %1587 = vmatpush1.msra.mxu1 %v3629_v57  ;;  %1620 = vmatprep.mubr.f32.mxu1 %v3628_v30 }
 0x551   :  { %1659 = vmatprep.subr.mxu0 %v3630_v16  ;;  %1730 = vmatprep.subr.mxu1 %v3631_v12 }
 0x5f0   :  { %v1377_v13 = vpop.f32.mrf.mxu0  ;;  %v1448_v21 = vpop.f32.mrf.mxu1 }
 0x5f1   :  { %v1453_v19 = vadd.f32 %v1377_v13, %v3632_v20  ;;  %v1455_v30 = vadd.f32 %v1448_v21, %v3635_v55 }
 0x5f2   :  { %v1379_v36 = vpop.f32.mrf.mxu0  ;;  %v1450_v27 = vpop.f32.mrf.mxu1 }
 0x5f3   :  { %v1970_v15 = vmul.f32 -1.442695, %v1453_v19  ;;  %v1454_v14 = vadd.f32 %v1379_v36, %v3633_v6  ;;  %v1456_v57 = vadd.f32 %v1450_v27, %v3634_v56 }
 0x5f5   :  { %2121 = vpow2.f32 %v1970_v15  ;;  %v1971_v32 = vmul.f32 -1.442695, %v1454_v14  ;;  %v1972_v17 = vmul.f32 -1.442695, %v1456_v57  ;;  %v1843_v57 = vld [vmem:[#allocation6 + $0x70] sm:$0xff] }
 0x5f7   :  { %2123 = vpow2.f32 %v1971_v32 }
 0x5f8   :  { %2125 = vtanh.f32 %v1455_v30  ;;  %v1844_v30 = vld [vmem:[#allocation6 + $0x78] sm:$0xff] }
 0x5f9   :  { %2127 = vpow2.f32 %v1972_v17 }
 0x602   :  { %v2122_v16 = vpop.eup %2121 }
 0x603   :  { %v1460_v33 = vadd.f32 1.0, %v2122_v16  ;;  %v1842_v16 = vld [vmem:[#allocation6 + $0x68] sm:$0xff] }
 0x604   :  { %v2124_v12 = vpop.eup %2123 }
 0x605   :  { %2129 = vrcp.f32 %v1460_v33  ;;  %v1466_v13 = vadd.f32 1.0, %v2124_v12  ;;  %v2126_v19 = vpop.eup %2125  ;;  %v1841_v12 = vld [vmem:[#allocation6 + $0x60] sm:$0xff] }
 0x606   :  { %v2128_v20 = vpop.eup %2127 }
 0x607   :  { %2131 = vrcp.f32 %v1466_v13  ;;  %v1473_v6 = vadd.f32 1.0, %v2128_v20  ;;  %v1840_v13 = vld [vmem:[#allocation6 + $0x58] sm:$0xff]  ;;  %v1838_v20 = vld [vmem:[#allocation6 + $0x48] sm:$0xff] }
 0x609   :  { %2133 = vrcp.f32 %v1473_v6  ;;  %v1834_v6 = vld [vmem:[#allocation6 + $0x28] sm:$0xff] }
 0x612   :  { %v2130_v15 = vpop.eup %2129 }
 0x613   :  { %v1477_v36 = vmul.f32 %v2130_v15, %v2126_v19  ;;  %v1839_v19 = vld [vmem:[#allocation6 + $0x50] sm:$0xff]  ;;  %v1837_v15 = vld [vmem:[#allocation6 + $0x40] sm:$0xff] }
 0x614   :  { %v2132_v14 = vpop.eup %2131 }
 0x615   :  { %v1476_v32 = vmul.f32 %v2132_v14, %v3208_v58  ;;  %v1835_v14 = vld [vmem:[#allocation6 + $0x30] sm:$0xff] }
 0x616   :  { %v2134_v55 = vpop.eup %2133 }
 0x617   :  { %v3282_v56 = vadd.f32 %v1477_v36, %v1476_v32  ;;  %v1836_v36 = vld [vmem:[#allocation6 + $0x38] sm:$0xff]  ;;  %v1833_v32 = vld [vmem:[#allocation6 + $0x20] sm:$0xff] }
 0x619   :  { %2135 = vtanh.f32 %v3282_v56 }
 0x626   :  { %v2136_v27 = vpop.eup %2135 }
 0x627   :  { %v1480_v21 = vmul.f32 %v2136_v27, %v2134_v55  ;;  %v1831_v55 = vld [vmem:[#allocation6 + $0x10] sm:$0xff]  ;;  %v1830_v27 = vld [vmem:[#allocation6 + $0x8] sm:$0xff] }
 0x629   :  { %1550 = vmatmul.mubr.f32.vlgmr.msra.gmra.mxu0 %v1480_v21  ;;  %1621 = vmatmul.mubr.f32.vlgmr.msra.gmra.mxu1 %v1480_v21  ;;  %v1829_v21 = vld [vmem:[#allocation6] sm:$0xff] }
 0x62a   :  { %1660 = vmatpush1.msra.mxu0 %v2939_v45  ;;  %1731 = vmatpush1.msra.mxu1 %v2942_v3  ;;  %v3636_v45 = vld [vmem:[#allocation13_spill] sm:$0xff]  ;;  %v3637_v3 = vld [vmem:[#allocation34_spill] sm:$0xff] }
 0x62b   :  { %1661 = vmatprep.subr.mxu0 %v2945_v2  ;;  %1732 = vmatprep.subr.mxu1 %v2948_v7  ;;  %v3638_v2 = vld [vmem:[#allocation36_spill] sm:$0xff]  ;;  %v3639_v7 = vld [vmem:[#allocation37_spill] sm:$0xff] }
 0x62c   :  { %1662 = vmatpush1.msra.mxu0 %v2951_v60  ;;  %1733 = vmatpush1.msra.mxu1 %v2954_v63  ;;  %v3640_v60 = vld [vmem:[#allocation35_spill] sm:$0xff]  ;;  %v3641_v63 = vld [vmem:[#allocation17_spill] sm:$0xff] }
 0x62d   :  { %1663 = vmatprep.subr.mxu0 %v2957_v1  ;;  %1734 = vmatprep.subr.mxu1 %v2960_v5  ;;  %v3642_v1 = vld [vmem:[#allocation18_spill] sm:$0xff]  ;;  %v3643_v5 = vld [vmem:[#allocation19_spill] sm:$0xff] }
 0x62e   :  { %1664 = vmatpush1.msra.mxu0 %v2963_v62  ;;  %1735 = vmatpush1.msra.mxu1 %v2966_v59  ;;  %v3644_v62 = vld [vmem:[#allocation20_spill] sm:$0xff]  ;;  %v3645_v59 = vld [vmem:[#allocation21_spill] sm:$0xff] }
 0x62f   :  { %1665 = vmatprep.subr.mxu0 %v2969_v4  ;;  %1736 = vmatprep.subr.mxu1 %v2972_v11  ;;  %v3646_v4 = vld [vmem:[#allocation22_spill] sm:$0xff]  ;;  %v3647_v11 = vld [vmem:[#allocation23_spill] sm:$0xff] }
 0x630   :  { %1666 = vmatpush1.msra.mxu0 %v2975_v10  ;;  %1737 = vmatpush1.msra.mxu1 %v2978_v18  ;;  %v3648_v10 = vld [vmem:[#allocation24_spill] sm:$0xff]  ;;  %v3649_v18 = vld [vmem:[#allocation25_spill] sm:$0xff] }
 0x631   :  { %1667 = vmatprep.subr.mxu0 %v2981_v8  ;;  %1738 = vmatprep.subr.mxu1 %v2984_v34  ;;  %v3650_v8 = vld [vmem:[#allocation26_spill] sm:$0xff]  ;;  %v3651_v34 = vld [vmem:[#allocation27_spill] sm:$0xff] }
 0x632   :  { %1668 = vmatpush1.msra.mxu0 %v3589_v22  ;;  %1739 = vmatpush1.msra.mxu1 %v3590_v23  ;;  %v3655_v23 = vld [vmem:[#allocation56_spill] sm:$0xff] }
 0x633   :  { %1669 = vmatprep.subr.mxu0 %v2993_v38  ;;  %1740 = vmatprep.subr.mxu1 %v2996_v54  ;;  %v3654_v54 = vld [vmem:[#allocation54_spill] sm:$0xff] }
 0x634   :  { %1670 = vmatpush1.msra.mxu0 %v2999_v0  ;;  %1741 = vmatpush1.msra.mxu1 %v3002_v61 }
 0x635   :  { %1671 = vmatprep.subr.mxu0 %v3005_v35  ;;  %1742 = vmatprep.subr.mxu1 %v3008_v37  ;;  %v3652_v35 = vmov 0.0   ;;  %v3653_v37 = vld [vmem:[#allocation28_spill] sm:$0xff] }
 0x636   :  { %1672 = vmatpush1.msra.mxu0 %v3085_v24  ;;  %1743 = vmatpush1.msra.mxu1 %v3088_v25 }
 0x637   :  { %1673 = vmatprep.subr.mxu0 %v3091_v26  ;;  %1744 = vmatprep.subr.mxu1 %v3094_v28 }
 0x638   :  { %1674 = vmatpush1.msra.mxu0 %v3097_v29  ;;  %1745 = vmatpush1.msra.mxu1 %v3100_v31  ;;  %v3656_v29 = vld [vmem:[#allocation57_spill] sm:$0xff] }
 0x639   :  { %1675 = vmatprep.subr.mxu0 %v3103_v9  ;;  %1746 = vmatprep.subr.mxu1 %v3106_v39  ;;  %v3657_v9 = vld [vmem:[#allocation55_spill] sm:$0xff] }
 0x63a   :  { %1676 = vmatpush1.msra.mxu0 %v3109_v40  ;;  %1747 = vmatpush1.msra.mxu1 %v3112_v41 }
 0x63b   :  { %1677 = vmatprep.subr.mxu0 %v3115_v42  ;;  %1748 = vmatprep.subr.mxu1 %v3118_v43 }
 0x63c   :  { %1678 = vmatpush1.msra.mxu0 %v3121_v44  ;;  %1749 = vmatpush1.msra.mxu1 %v3124_v46 }
 0x63d   :  { %1679 = vmatprep.subr.mxu0 %v3127_v47  ;;  %1750 = vmatprep.subr.mxu1 %v3130_v48 }
 0x63e   :  { %1680 = vmatpush1.msra.mxu0 %v3133_v49  ;;  %1751 = vmatpush1.msra.mxu1 %v3136_v50 }
 0x63f   :  { %1681 = vmatprep.subr.mxu0 %v3139_v51  ;;  %1752 = vmatprep.subr.mxu1 %v3142_v52 }
 0x640   :  { %1682 = vmatpush1.msra.mxu0 %v3145_v53  ;;  %1753 = vmatpush1.msra.mxu1 %v3636_v45 }
 0x641   :  { %1683 = vmatprep.subr.mxu0 %v3637_v3  ;;  %1754 = vmatprep.subr.mxu1 %v3638_v2  ;;  %v3658_v3 = vld [vmem:[#allocation58_spill] sm:$0xff] }
 0x642   :  { %1684 = vmatpush1.msra.mxu0 %v3639_v7  ;;  %1755 = vmatpush1.msra.mxu1 %v3640_v60 }
 0x643   :  { %1685 = vmatprep.subr.mxu0 %v3641_v63  ;;  %1756 = vmatprep.subr.mxu1 %v3642_v1  ;;  %v3659_v63 = vld [vmem:[#allocation60_spill] sm:$0xff] }
 0x644   :  { %1686 = vmatpush1.msra.mxu0 %v3643_v5  ;;  %1757 = vmatpush1.msra.mxu1 %v3644_v62 }
 0x645   :  { %1687 = vmatprep.subr.mxu0 %v3645_v59  ;;  %1758 = vmatprep.subr.mxu1 %v3646_v4  ;;  %v3660_v4 = vld [vmem:[#allocation61_spill] sm:$0xff] }
 0x646   :  { %1688 = vmatpush1.msra.mxu0 %v3647_v11  ;;  %1759 = vmatpush1.msra.mxu1 %v3648_v10  ;;  %v3661_v10 = vld [vmem:[#allocation59_spill] sm:$0xff] }
 0x647   :  { %1689 = vmatprep.subr.mxu0 %v3649_v18  ;;  %1760 = vmatprep.subr.mxu1 %v3650_v8 }
 0x648   :  { %1690 = vmatpush1.msra.mxu0 %v3651_v34  ;;  %1723 = vmatprep.mubr.f32.mxu0 %v3652_v35 }
 0x649   :  { %1761 = vmatpush1.msra.mxu1 %v3653_v37  ;;  %1794 = vmatprep.mubr.f32.mxu1 %v3652_v35 }
 0x64a   :  { %1997 = vmatprep.subr.mxu0 %v3652_v35 }
 0x6e9   :  { %v1551_v38 = vpop.f32.mrf.mxu0  ;;  %v1622_v25 = vpop.f32.mrf.mxu1 }
 0x6ea   :  { %v1627_v0 = vadd.f32 %v1551_v38, %v3654_v54  ;;  %v1629_v39 = vadd.f32 %v1622_v25, %v3657_v9  ;;  %v1979_v9 = vld [vmem:[%s3390_s5] ss:$0 sm:$0xff] }
 0x6eb   :  { %v1553_v61 = vpop.f32.mrf.mxu0  ;;  %v1624_v28 = vpop.f32.mrf.mxu1 }
 0x6ec   :  { %v1973_v22 = vmul.f32 -1.442695, %v1627_v0  ;;  %v1628_v24 = vadd.f32 %v1553_v61, %v3655_v23  ;;  %v1630_v31 = vadd.f32 %v1624_v28, %v3656_v29 }
 0x6ee   :  { %2137 = vpow2.f32 %v1973_v22  ;;  %v1974_v26 = vmul.f32 -1.442695, %v1628_v24  ;;  %v1975_v40 = vmul.f32 -1.442695, %v1630_v31 }
 0x6f0   :  { %2139 = vpow2.f32 %v1974_v26 }
 0x6f1   :  { %2141 = vtanh.f32 %v1629_v39 }
 0x6f2   :  { %2143 = vpow2.f32 %v1975_v40 }
 0x6fb   :  { %v2138_v41 = vpop.eup %2137 }
 0x6fc   :  { %v1634_v42 = vadd.f32 1.0, %v2138_v41 }
 0x6fd   :  { %v2140_v43 = vpop.eup %2139 }
 0x6fe   :  { %2145 = vrcp.f32 %v1634_v42  ;;  %v1640_v44 = vadd.f32 1.0, %v2140_v43  ;;  %v2142_v46 = vpop.eup %2141 }
 0x6ff   :  { %v2144_v47 = vpop.eup %2143 }
 0x700   :  { %2147 = vrcp.f32 %v1640_v44  ;;  %v1647_v51 = vadd.f32 1.0, %v2144_v47 }
 0x702   :  { %2149 = vrcp.f32 %v1647_v51 }
 0x70b   :  { %v2146_v48 = vpop.eup %2145 }
 0x70c   :  { %v1651_v49 = vmul.f32 %v2146_v48, %v2142_v46 }
 0x70d   :  { %v2148_v50 = vpop.eup %2147 }
 0x70e   :  { %v1650_v52 = vmul.f32 %v2148_v50, %v3282_v56  ;;  %v1832_v56 = vld [vmem:[#allocation6 + $0x18] sm:$0xff] }
 0x70f   :  { %v2150_v58 = vpop.eup %2149 }
 0x710   :  { %v3355_v53 = vadd.f32 %v1651_v49, %v1650_v52 }
 0x712   :  { %2151 = vtanh.f32 %v3355_v53 }
 0x71f   :  { %v2152_v33 = vpop.eup %2151 }
 0x720   :  { %v1654_v17 = vmul.f32 %v2152_v33, %v2150_v58 }
 0x722   :  { %1724 = vmatmul.mubr.f32.vlgmr.msra.gmra.mxu0 %v1654_v17  ;;  %1795 = vmatmul.mubr.f32.vlgmr.msra.gmra.mxu1 %v1654_v17 }
 0x723   :  { %1998 = vmatpush3.msra.mxu0 %v1844_v30  ;;  %2029 = vmatprep.mubr.msk.f32.mxu0 %vm2306_vm1, %v3652_v35 }
 0x724   :  { %1999 = vmatprep.subr.mxu0 %v3652_v35 }
 0x725   :  { %2000 = vmatpush3.msra.mxu0 %v1843_v57 }
 0x726   :  { %2001 = vmatprep.subr.mxu0 %v3652_v35 }
 0x727   :  { %2002 = vmatpush3.msra.mxu0 %v1842_v16 }
 0x728   :  { %2003 = vmatprep.subr.mxu0 %v3652_v35 }
 0x729   :  { %2004 = vmatpush3.msra.mxu0 %v1841_v12 }
 0x72a   :  { %2005 = vmatprep.subr.mxu0 %v3652_v35 }
 0x72b   :  { %2006 = vmatpush3.msra.mxu0 %v1840_v13 }
 0x72c   :  { %2007 = vmatprep.subr.mxu0 %v3652_v35 }
 0x72d   :  { %2008 = vmatpush3.msra.mxu0 %v1839_v19 }
 0x72e   :  { %2009 = vmatprep.subr.mxu0 %v3652_v35 }
 0x72f   :  { %2010 = vmatpush3.msra.mxu0 %v1838_v20 }
 0x730   :  { %2011 = vmatprep.subr.mxu0 %v3652_v35 }
 0x731   :  { %2012 = vmatpush3.msra.mxu0 %v1837_v15 }
 0x732   :  { %2013 = vmatprep.subr.mxu0 %v3652_v35 }
 0x733   :  { %2014 = vmatpush3.msra.mxu0 %v1836_v36 }
 0x734   :  { %2015 = vmatprep.subr.mxu0 %v3652_v35 }
 0x735   :  { %2016 = vmatpush3.msra.mxu0 %v1835_v14 }
 0x736   :  { %2017 = vmatprep.subr.mxu0 %v3652_v35 }
 0x737   :  { %2018 = vmatpush3.msra.mxu0 %v1834_v6 }
 0x738   :  { %2019 = vmatprep.subr.mxu0 %v3652_v35 }
 0x739   :  { %2020 = vmatpush3.msra.mxu0 %v1833_v32 }
 0x73a   :  { %2021 = vmatprep.subr.mxu0 %v3652_v35 }
 0x73b   :  { %2022 = vmatpush3.msra.mxu0 %v1832_v56 }
 0x73c   :  { %2023 = vmatprep.subr.mxu0 %v3652_v35 }
 0x73d   :  { %2024 = vmatpush3.msra.mxu0 %v1831_v55 }
 0x73e   :  { %2025 = vmatprep.subr.mxu0 %v3652_v35 }
 0x73f   :  { %2026 = vmatpush3.msra.mxu0 %v1830_v27 }
 0x740   :  { %2027 = vmatprep.subr.mxu0 %v3652_v35 }
 0x741   :  { %2028 = vmatpush3.msra.mxu0 %v1829_v21 }
 0x7e2   :  { %v1725_v45 = vpop.f32.mrf.mxu0  ;;  %v1796_v5 = vpop.f32.mrf.mxu1 }
 0x7e3   :  { %v1801_v2 = vadd.f32 %v1725_v45, %v3658_v3  ;;  %v1803_v18 = vadd.f32 %v1796_v5, %v3661_v10 }
 0x7e4   :  { %v1727_v7 = vpop.f32.mrf.mxu0  ;;  %v1798_v59 = vpop.f32.mrf.mxu1 }
 0x7e5   :  { %v1976_v60 = vmul.f32 -1.442695, %v1801_v2  ;;  %v1802_v1 = vadd.f32 %v1727_v7, %v3659_v63  ;;  %v1804_v11 = vadd.f32 %v1798_v59, %v3660_v4 }
 0x7e7   :  { %2153 = vpow2.f32 %v1976_v60  ;;  %v1977_v62 = vmul.f32 -1.442695, %v1802_v1  ;;  %v1978_v8 = vmul.f32 -1.442695, %v1804_v11 }
 0x7e9   :  { %2155 = vpow2.f32 %v1977_v62 }
 0x7ea   :  { %2157 = vtanh.f32 %v1803_v18 }
 0x7eb   :  { %2159 = vpow2.f32 %v1978_v8 }
 0x7f4   :  { %v2154_v34 = vpop.eup %2153 }
 0x7f5   :  { %v1808_v35 = vadd.f32 1.0, %v2154_v34 }
 0x7f6   :  { %v2156_v37 = vpop.eup %2155 }
 0x7f7   :  { %2161 = vrcp.f32 %v1808_v35  ;;  %v1814_v38 = vadd.f32 1.0, %v2156_v37  ;;  %v2158_v54 = vpop.eup %2157 }
 0x7f8   :  { %v2160_v0 = vpop.eup %2159 }
 0x7f9   :  { %2163 = vrcp.f32 %v1814_v38  ;;  %v1821_v24 = vadd.f32 1.0, %v2160_v0 }
 0x7fb   :  { %2165 = vrcp.f32 %v1821_v24 }
 0x804   :  { %v2162_v61 = vpop.eup %2161 }
 0x805   :  { %v1825_v22 = vmul.f32 %v2162_v61, %v2158_v54 }
 0x806   :  { %v2164_v23 = vpop.eup %2163 }
 0x807   :  { %v1824_v25 = vmul.f32 %v2164_v23, %v3355_v53 }
 0x808   :  { %v2166_v28 = vpop.eup %2165 }
 0x809   :  { %v1826_v26 = vadd.f32 %v1825_v22, %v1824_v25 }
 0x80b   :  { %2167 = vtanh.f32 %v1826_v26 }
 0x818   :  { %v2168_v29 = vpop.eup %2167 }
 0x819   :  { %v1828_v31 = vmul.f32 %v2168_v29, %v2166_v28 }
 0x81b   :  { %2030 = vmatmul.mubr.f32.vlgmr.msra.gmra.mxu0 %v1828_v31 }
 0x8db   :  { %v1918_v39 = vpop.f32.mrf.mxu0 }
 0x8dc   :  { %v1919_v40 = vadd.f32 %v1979_v9, %v1918_v39 }
 0x8dd   :  { %v2031_v41 = vpop.f32.mrf.mxu0 }
 0x8de   :  { %1922 = vst [vmem:[#allocation8] sm:$0xff] %v1919_v40 }
 0x8df   :  { %2284 = shalt.err (!%p2281_p0)
}
 0x8e0   :  { %1932 = dma.vmem_to_hbm [thread:$0]  %s1930_s17, 128, %s3391_s6, [#allocation5]  }
 0x8e1   :  { %2297 = dma.done.wait [#allocation5], 128  }
 0x8e2   :  { %2298 = vsyncadd [#allocation5], 4294967168 }
 0x8e3   :  { %1936 = vsyncpa [#allocation4], 1 }
 0x8e4   :  { %1937 = vsyncpa [#allocation7], 1 }
 0x8e5   :  { %1938 = vsyncpa [#allocation5], 1 }

</bundles_post_ra>
